<compile_context>
chip_gen: v7x
topology: tpu7x:2x2x1
jax: 0.10.0
libtpu: 0.0.40
codegen_flags: <defaults>
</compile_context>

<pallas_src>
import functools

import jax
import jax.numpy as jnp
from jax.experimental import pallas as pl
from jax.experimental.pallas import tpu as pltpu


def _round_up(n, m):
    return ((n + m - 1) // m) * m


def _pick_batch_tile(B):
    """Heuristic tile: 1 step for tiny batches, else few big (even) steps."""
    if B <= 128:
        return 128
    # aim for ~2 steps (both v7x TCs busy, few steps on single-TC v5e/v6e),
    # capped at 512 rows per tile for large batches.
    return min(512, _round_up(pl.cdiv(B, 2), 128))


# -----------------------------------------------------------------------------
# Fused VAE forward kernel (one batch tile per grid step, weights resident)
# -----------------------------------------------------------------------------
def _vae_fwd_kernel(
    x_ref,              # [TB, D0p]       compute dtype (f32 or bf16)
    w1_ref, b1_ref,     # [D0p, D1p], [1, D1p]      (biases always f32)
    wml_ref, bml_ref,   # [D1p, 2*D2p], [1, 2*D2p]  (fc21 | fc22 fused)
    w3_ref, b3_ref,     # [D2p, D1p], [1, D1p]
    w4_ref, b4_ref,     # [D1p, D0p], [1, D0p]
    eps_ref,            # [TB, D2p]  f32  (pre-sampled standard normal noise)
    recon_ref,          # [TB, D0p]  out dtype (bf16 by default)
    ml_ref,             # [TB, 2*D2p] f32  (fused mu | logvar)
    *,
    d2p,
):
    cdt = w1_ref.dtype  # matmul input dtype; accumulation is always f32
    x = x_ref[...]

    # encode: h1 = relu(fc1(x))
    h1 = jnp.dot(x, w1_ref[...], preferred_element_type=jnp.float32) + b1_ref[...]
    h1 = jnp.maximum(h1, 0.0)

    # fused fc21|fc22: one MXU pass over h1, lane-dense N = 2*d2p (=128)
    ml = (
        jnp.dot(h1.astype(cdt), wml_ref[...], preferred_element_type=jnp.float32)
        + bml_ref[...]
    )
    mu = ml[:, :d2p]
    logvar = ml[:, d2p:]

    # reparameterize: z = mu + eps * exp(0.5 * logvar)   (elementwise in f32)
    std = jnp.exp(0.5 * logvar)
    z = mu + eps_ref[...] * std

    # decode: h3 = relu(fc3(z)); recon = sigmoid(fc4(h3))
    h3 = (
        jnp.dot(z.astype(cdt), w3_ref[...], preferred_element_type=jnp.float32)
        + b3_ref[...]
    )
    h3 = jnp.maximum(h3, 0.0)
    logits = (
        jnp.dot(h3.astype(cdt), w4_ref[...], preferred_element_type=jnp.float32)
        + b4_ref[...]
    )

    recon_ref[...] = jax.nn.sigmoid(logits).astype(recon_ref.dtype)
    ml_ref[...] = ml   # fused mu|logvar, single 128-lane-dense store


# -----------------------------------------------------------------------------
# One-time weight packing (pad / fuse / cast) -- OUTSIDE the per-call hot path
# -----------------------------------------------------------------------------
def pack_vae_params(params, weight_dtype=jnp.bfloat16):
    """Pad feature dims, fuse fc21|fc22, cast to compute dtype. Run once."""
    D0, D1 = params["w1"].shape
    D2 = params["w21"].shape[1]
    D0p, D1p = _round_up(D0, 128), _round_up(D1, 128)
    D2p = max(64, _round_up(D2, 64))   # 2*D2p is a lane-dense multiple of 128

    def pad2(a, rows, cols):
        return jnp.pad(a, ((0, rows - a.shape[0]), (0, cols - a.shape[1])))

    cdt = weight_dtype
    return {
        "w1": pad2(params["w1"], D0p, D1p).astype(cdt),
        "b1": pad2(params["b1"], 1, D1p).astype(jnp.float32),
        "wml": jnp.concatenate(
            [pad2(params["w21"], D1p, D2p), pad2(params["w22"], D1p, D2p)],
            axis=1,
        ).astype(cdt),
        "bml": jnp.concatenate(
            [pad2(params["b21"], 1, D2p), pad2(params["b22"], 1, D2p)], axis=1
        ).astype(jnp.float32),
        "w3": pad2(params["w3"], D2p, D1p).astype(cdt),
        "b3": pad2(params["b3"], 1, D1p).astype(jnp.float32),
        "w4": pad2(params["w4"], D1p, D0p).astype(cdt),
        "b4": pad2(params["b4"], 1, D0p).astype(jnp.float32),
    }


# -----------------------------------------------------------------------------
# Per-call wrapper: pad activations, set up BlockSpecs / grid, slice outputs
# -----------------------------------------------------------------------------
@functools.partial(jax.jit, static_argnames=("batch_tile", "out_dtype"))
def vae_forward(x, packed, eps, *, batch_tile=None, out_dtype=None):
    """Fused VAE forward pass as a single Pallas TPU kernel.

    x:      [B, D0] float32 (already flattened, like x.view(-1, lw[0]))
    packed: output of pack_vae_params (padded / fused / cast weights)
    eps:    [B, D2] float32 standard normal noise (stand-in for randn_like)
    returns (recon [B, D0] out_dtype, mu [B, D2] f32, logvar [B, D2] f32)
    """
    B, D0 = x.shape
    D2 = eps.shape[1]
    D0p, D1p = packed["w1"].shape
    D2p = packed["w3"].shape[0]
    cdt = packed["w1"].dtype
    odt = out_dtype if out_dtype is not None else cdt

    tb = batch_tile if batch_tile is not None else _pick_batch_tile(B)
    n_steps = pl.cdiv(B, tb)
    Bp = n_steps * tb

    def pad2(a, rows, cols):
        return jnp.pad(a, ((0, rows - a.shape[0]), (0, cols - a.shape[1])))

    xp = pad2(x, Bp, D0p).astype(cdt)          # bf16 halves input DMA bytes
    epsp = pad2(eps, Bp, D2p).astype(jnp.float32)

    def const_spec(shape):
        # Whole array, same block every grid step (weights stay resident).
        return pl.BlockSpec(shape, lambda i: (0,) * len(shape))

    def batch_spec(feat):
        # Batch-tiled activations.
        return pl.BlockSpec((tb, feat), lambda i: (i, 0))

    in_specs = [
        batch_spec(D0p),                                        # x
        const_spec((D0p, D1p)), const_spec((1, D1p)),           # fc1
        const_spec((D1p, 2 * D2p)), const_spec((1, 2 * D2p)),   # fc21|fc22
        const_spec((D2p, D1p)), const_spec((1, D1p)),           # fc3
        const_spec((D1p, D0p)), const_spec((1, D0p)),           # fc4
        batch_spec(D2p),                                        # eps
    ]
    out_specs = [batch_spec(D0p), batch_spec(2 * D2p)]
    out_shape = [
        jax.ShapeDtypeStruct((Bp, D0p), odt),          # recon (bf16 default)
        jax.ShapeDtypeStruct((Bp, 2 * D2p), jnp.float32),  # mu | logvar fused
    ]

    # Advisory cost so XLA doesn't treat the custom call as a zero-cost node.
    w_isz = jnp.dtype(cdt).itemsize
    o_isz = jnp.dtype(odt).itemsize
    mm_weights = D0p * D1p + D1p * 2 * D2p + D2p * D1p + D1p * D0p
    cost = pl.CostEstimate(
        flops=2 * Bp * mm_weights,
        transcendentals=Bp * (D2p + D0p),               # exp + sigmoid
        bytes_accessed=(
            Bp * D0p * w_isz                            # x
            + mm_weights * w_isz                        # weights (once)
            + (2 * D1p + 2 * D2p + D0p) * 4             # biases
            + Bp * D2p * 4                              # eps
            + Bp * D0p * o_isz                          # recon out
            + Bp * 2 * D2p * 4                          # mu|logvar out
        ),
    )

    recon_full, ml_full = pl.pallas_call(
        functools.partial(_vae_fwd_kernel, d2p=D2p),
        out_shape=out_shape,
        grid_spec=pltpu.PrefetchScalarGridSpec(
            num_scalar_prefetch=0,
            grid=(n_steps,),
            in_specs=in_specs,
            out_specs=out_specs,
        ),
        compiler_params=pltpu.CompilerParams(
            dimension_semantics=("parallel",),
        ),
        cost_estimate=cost,
    )(
        xp,
        packed["w1"], packed["b1"],
        packed["wml"], packed["bml"],
        packed["w3"], packed["b3"],
        packed["w4"], packed["b4"],
        epsp,
    )

    # Strip batch / lane padding and split the fused mu|logvar outside.
    recon = recon_full[:B, :D0]
    mu = ml_full[:B, :D2]
    logvar = ml_full[:B, D2p:D2p + D2]
    return recon, mu, logvar


# -----------------------------------------------------------------------------
# Deterministic parameter initialization (torch.nn.Linear-style uniform init)
# -----------------------------------------------------------------------------
def init_vae_params(key, layer_widths):
    D0, D1, D2 = layer_widths

    def linear(k, fan_in, fan_out):
        kw, kb = jax.random.split(k)
        bound = 1.0 / jnp.sqrt(fan_in)
        # Stored already transposed: [in, out]
        w = jax.random.uniform(kw, (fan_in, fan_out), jnp.float32, -bound, bound)
        b = jax.random.uniform(kb, (1, fan_out), jnp.float32, -bound, bound)
        return w, b

    keys = jax.random.split(key, 5)
    p = {}
    p["w1"], p["b1"] = linear(keys[0], D0, D1)    # fc1:  D0 -> D1
    p["w21"], p["b21"] = linear(keys[1], D1, D2)  # fc21: D1 -> D2
    p["w22"], p["b22"] = linear(keys[2], D1, D2)  # fc22: D1 -> D2
    p["w3"], p["b3"] = linear(keys[3], D2, D1)    # fc3:  D2 -> D1
    p["w4"], p["b4"] = linear(keys[4], D1, D0)    # fc4:  D1 -> D0
    return p


# -----------------------------------------------------------------------------
# Pure-JAX reference (same math / same casts, no Pallas) for correctness check
# -----------------------------------------------------------------------------
def vae_forward_ref(x, p, eps, weight_dtype=jnp.float32):
    cdt = weight_dtype

    def dot(a, w):
        return jnp.dot(a.astype(cdt), w.astype(cdt),
                       preferred_element_type=jnp.float32)

    h1 = jnp.maximum(dot(x, p["w1"]) + p["b1"], 0.0)
    mu = dot(h1, p["w21"]) + p["b21"]
    logvar = dot(h1, p["w22"]) + p["b22"]
    z = mu + eps * jnp.exp(0.5 * logvar)
    h3 = jnp.maximum(dot(z, p["w3"]) + p["b3"], 0.0)
    recon = jax.nn.sigmoid(dot(h3, p["w4"]) + p["b4"])
    return recon, mu, logvar


if __name__ == "__main__":
    # Shapes consistent with the module: flattened input dim D0, hidden D1,
    # latent D2 -> layer_widths = [D0, D1, D2].  B=256 gives 2 parallel grid
    # steps with the default tile (both v7x TensorCores busy).
    B, D0, D1, D2 = 256, 196, 64, 16
    layer_widths = [D0, D1, D2]

    key = jax.random.PRNGKey(0)
    k_x, k_eps, k_params = jax.random.split(key, 3)

    # Input shaped like flattened images [B, D0] (the module does x.view(-1, D0)).
    x = jax.random.uniform(k_x, (B, D0), jnp.float32)
    # torch.randn_like(std) -> deterministic pre-sampled noise here.
    eps = jax.random.normal(k_eps, (B, D2), jnp.float32)

    params = init_vae_params(k_params, layer_widths)

    # --- recommended config: bf16 weights/activations/recon, f32 accumulation
    packed_bf16 = pack_vae_params(params, jnp.bfloat16)   # packed ONCE
    recon, mu, logvar = vae_forward(x, packed_bf16, eps)
    jax.block_until_ready((recon, mu, logvar))
    r_ref, mu_ref, lv_ref = vae_forward_ref(x, params, eps, jnp.bfloat16)
    assert recon.dtype == jnp.bfloat16
    assert jnp.allclose(recon.astype(jnp.float32), r_ref, atol=2e-2, rtol=2e-2)
    assert jnp.allclose(mu, mu_ref, atol=2e-2, rtol=2e-2)
    assert jnp.allclose(logvar, lv_ref, atol=2e-2, rtol=2e-2)

    # --- full-precision path + ragged batch (exercises batch padding) -------
    packed_f32 = pack_vae_params(params, jnp.float32)
    xr, epsr = x[:100], eps[:100]
    recon32, mu32, lv32 = vae_forward(xr, packed_f32, epsr,
                                      out_dtype=jnp.float32)
    jax.block_until_ready((recon32, mu32, lv32))
    r32, m32, l32 = vae_forward_ref(xr, params, epsr, jnp.float32)
    assert jnp.allclose(recon32, r32, atol=1e-5, rtol=1e-5)
    assert jnp.allclose(mu32, m32, atol=1e-5, rtol=1e-5)
    assert jnp.allclose(lv32, l32, atol=1e-5, rtol=1e-5)

    print("KERNEL_OK")
</pallas_src>

<mosaic_0001>
module attributes {stable_mosaic.version = 11 : i64} {
  func.func @_vae_fwd_kernel(%arg0: i32, %arg1: memref<128x256xbf16, #tpu.memory_space<vmem>>, %arg2: memref<256x128xbf16, #tpu.memory_space<vmem>>, %arg3: memref<1x128xf32, #tpu.memory_space<vmem>>, %arg4: memref<128x128xbf16, #tpu.memory_space<vmem>>, %arg5: memref<1x128xf32, #tpu.memory_space<vmem>>, %arg6: memref<64x128xbf16, #tpu.memory_space<vmem>>, %arg7: memref<1x128xf32, #tpu.memory_space<vmem>>, %arg8: memref<128x256xbf16, #tpu.memory_space<vmem>>, %arg9: memref<1x256xf32, #tpu.memory_space<vmem>>, %arg10: memref<128x64xf32, #tpu.memory_space<vmem>>, %arg11: memref<128x256xbf16, #tpu.memory_space<vmem>>, %arg12: memref<128x128xf32, #tpu.memory_space<vmem>>) attributes {dimension_semantics = [#tpu.dimension_semantics<parallel>], iteration_bounds = array<i64: 2>, scalar_prefetch = 0 : i64, scratch_operands = 0 : i64, tpu.core_type = #tpu.core_type<tc>, window_params = [{transform_indices = @transform_0, window_bounds = array<i64: 128, 256>}, {pipeline_mode = #tpu.pipeline_mode<synchronous>, transform_indices = @transform_1, window_bounds = array<i64: 256, 128>}, {pipeline_mode = #tpu.pipeline_mode<synchronous>, transform_indices = @transform_2, window_bounds = array<i64: 1, 128>}, {pipeline_mode = #tpu.pipeline_mode<synchronous>, transform_indices = @transform_3, window_bounds = array<i64: 128, 128>}, {pipeline_mode = #tpu.pipeline_mode<synchronous>, transform_indices = @transform_4, window_bounds = array<i64: 1, 128>}, {pipeline_mode = #tpu.pipeline_mode<synchronous>, transform_indices = @transform_5, window_bounds = array<i64: 64, 128>}, {pipeline_mode = #tpu.pipeline_mode<synchronous>, transform_indices = @transform_6, window_bounds = array<i64: 1, 128>}, {pipeline_mode = #tpu.pipeline_mode<synchronous>, transform_indices = @transform_7, window_bounds = array<i64: 128, 256>}, {pipeline_mode = #tpu.pipeline_mode<synchronous>, transform_indices = @transform_8, window_bounds = array<i64: 1, 256>}, {transform_indices = @transform_9, window_bounds = array<i64: 128, 64>}, {transform_indices = @transform_10, window_bounds = array<i64: 128, 256>}, {transform_indices = @transform_11, window_bounds = array<i64: 128, 128>}]} {
    %c0 = arith.constant 0 : index
    %c0_0 = arith.constant 0 : index
    %0 = vector.load %arg1[%c0, %c0_0] : memref<128x256xbf16, #tpu.memory_space<vmem>>, vector<128x256xbf16>
    %c0_1 = arith.constant 0 : index
    %c0_2 = arith.constant 0 : index
    %1 = vector.load %arg2[%c0_1, %c0_2] : memref<256x128xbf16, #tpu.memory_space<vmem>>, vector<256x128xbf16>
    %cst = arith.constant dense<0.000000e+00> : vector<128x128xf32>
    %2 = tpu.matmul %0, %1, %cst {dimension_numbers = #tpu.dot_dimension_numbers<[1], [0], [0], [1], [0, 0, 1, 1], [], []>} : vector<128x256xbf16>, vector<256x128xbf16>, vector<128x128xf32> -> vector<128x128xf32>
    %c0_3 = arith.constant 0 : index
    %c0_4 = arith.constant 0 : index
    %3 = vector.load %arg3[%c0_3, %c0_4] : memref<1x128xf32, #tpu.memory_space<vmem>>, vector<1x128xf32>
    %4 = vector.broadcast %3 : vector<1x128xf32> to vector<128x128xf32>
    %5 = arith.addf %2, %4 : vector<128x128xf32>
    %cst_5 = arith.constant 0.000000e+00 : f32
    %6 = vector.broadcast %cst_5 : f32 to vector<128x128xf32>
    %7 = arith.maximumf %5, %6 : vector<128x128xf32>
    %8 = arith.truncf %7 : vector<128x128xf32> to vector<128x128xbf16>
    %c0_6 = arith.constant 0 : index
    %c0_7 = arith.constant 0 : index
    %9 = vector.load %arg4[%c0_6, %c0_7] : memref<128x128xbf16, #tpu.memory_space<vmem>>, vector<128x128xbf16>
    %cst_8 = arith.constant dense<0.000000e+00> : vector<128x128xf32>
    %10 = tpu.matmul %8, %9, %cst_8 {dimension_numbers = #tpu.dot_dimension_numbers<[1], [0], [0], [1], [0, 0, 1, 1], [], []>} : vector<128x128xbf16>, vector<128x128xbf16>, vector<128x128xf32> -> vector<128x128xf32>
    %c0_9 = arith.constant 0 : index
    %c0_10 = arith.constant 0 : index
    %11 = vector.load %arg5[%c0_9, %c0_10] : memref<1x128xf32, #tpu.memory_space<vmem>>, vector<1x128xf32>
    %12 = vector.broadcast %11 : vector<1x128xf32> to vector<128x128xf32>
    %13 = arith.addf %10, %12 : vector<128x128xf32>
    %14 = vector.extract_strided_slice %13 {offsets = [0, 0], sizes = [128, 64], strides = [1, 1]} : vector<128x128xf32> to vector<128x64xf32>
    %15 = vector.extract_strided_slice %13 {offsets = [0, 64], sizes = [128, 64], strides = [1, 1]} : vector<128x128xf32> to vector<128x64xf32>
    %cst_11 = arith.constant 5.000000e-01 : f32
    %16 = vector.broadcast %cst_11 : f32 to vector<128x64xf32>
    %17 = arith.mulf %16, %15 : vector<128x64xf32>
    %18 = math.exp %17 : vector<128x64xf32>
    %c0_12 = arith.constant 0 : index
    %c0_13 = arith.constant 0 : index
    %19 = vector.load %arg10[%c0_12, %c0_13] : memref<128x64xf32, #tpu.memory_space<vmem>>, vector<128x64xf32>
    %20 = arith.mulf %19, %18 : vector<128x64xf32>
    %21 = arith.addf %14, %20 : vector<128x64xf32>
    %22 = arith.truncf %21 : vector<128x64xf32> to vector<128x64xbf16>
    %c0_14 = arith.constant 0 : index
    %c0_15 = arith.constant 0 : index
    %23 = vector.load %arg6[%c0_14, %c0_15] : memref<64x128xbf16, #tpu.memory_space<vmem>>, vector<64x128xbf16>
    %cst_16 = arith.constant dense<0.000000e+00> : vector<128x128xf32>
    %24 = tpu.matmul %22, %23, %cst_16 {dimension_numbers = #tpu.dot_dimension_numbers<[1], [0], [0], [1], [0, 0, 1, 1], [], []>} : vector<128x64xbf16>, vector<64x128xbf16>, vector<128x128xf32> -> vector<128x128xf32>
    %c0_17 = arith.constant 0 : index
    %c0_18 = arith.constant 0 : index
    %25 = vector.load %arg7[%c0_17, %c0_18] : memref<1x128xf32, #tpu.memory_space<vmem>>, vector<1x128xf32>
    %26 = vector.broadcast %25 : vector<1x128xf32> to vector<128x128xf32>
    %27 = arith.addf %24, %26 : vector<128x128xf32>
    %cst_19 = arith.constant 0.000000e+00 : f32
    %28 = vector.broadcast %cst_19 : f32 to vector<128x128xf32>
    %29 = arith.maximumf %27, %28 : vector<128x128xf32>
    %30 = arith.truncf %29 : vector<128x128xf32> to vector<128x128xbf16>
    %c0_20 = arith.constant 0 : index
    %c0_21 = arith.constant 0 : index
    %31 = vector.load %arg8[%c0_20, %c0_21] : memref<128x256xbf16, #tpu.memory_space<vmem>>, vector<128x256xbf16>
    %cst_22 = arith.constant dense<0.000000e+00> : vector<128x256xf32>
    %32 = tpu.matmul %30, %31, %cst_22 {dimension_numbers = #tpu.dot_dimension_numbers<[1], [0], [0], [1], [0, 0, 1, 1], [], []>} : vector<128x128xbf16>, vector<128x256xbf16>, vector<128x256xf32> -> vector<128x256xf32>
    %c0_23 = arith.constant 0 : index
    %c0_24 = arith.constant 0 : index
    %33 = vector.load %arg9[%c0_23, %c0_24] : memref<1x256xf32, #tpu.memory_space<vmem>>, vector<1x256xf32>
    %34 = vector.broadcast %33 : vector<1x256xf32> to vector<128x256xf32>
    %35 = arith.addf %32, %34 : vector<128x256xf32>
    %36 = arith.negf %35 : vector<128x256xf32>
    %37 = math.exp %36 : vector<128x256xf32>
    %cst_25 = arith.constant 1.000000e+00 : f32
    %38 = vector.broadcast %cst_25 : f32 to vector<128x256xf32>
    %39 = arith.addf %38, %37 : vector<128x256xf32>
    %40 = arith.divf %38, %39 : vector<128x256xf32>
    %41 = arith.truncf %40 : vector<128x256xf32> to vector<128x256xbf16>
    %c0_26 = arith.constant 0 : index
    %c0_27 = arith.constant 0 : index
    %42 = vector.load %arg11[%c0_26, %c0_27] : memref<128x256xbf16, #tpu.memory_space<vmem>>, vector<128x256xbf16>
    tpu.vector_store %arg11[%c0_26, %c0_27], %41 {strides = array<i32>} : memref<128x256xbf16, #tpu.memory_space<vmem>>, vector<128x256xbf16>,
    %c0_28 = arith.constant 0 : index
    %c0_29 = arith.constant 0 : index
    %43 = vector.load %arg12[%c0_28, %c0_29] : memref<128x128xf32, #tpu.memory_space<vmem>>, vector<128x128xf32>
    tpu.vector_store %arg12[%c0_28, %c0_29], %13 {strides = array<i32>} : memref<128x128xf32, #tpu.memory_space<vmem>>, vector<128x128xf32>,
    return
  }
  func.func @transform_0(%arg0: i32) -> (i32, i32) {
    %c0_i32 = arith.constant 0 : i32
    %c0_i32_0 = arith.constant 0 : i32
    return %arg0, %c0_i32 : i32, i32
  }
  func.func @transform_1(%arg0: i32) -> (i32, i32) {
    %c0_i32 = arith.constant 0 : i32
    %c0_i32_0 = arith.constant 0 : i32
    %c0_i32_1 = arith.constant 0 : i32
    return %c0_i32, %c0_i32_0 : i32, i32
  }
  func.func @transform_2(%arg0: i32) -> (i32, i32) {
    %c0_i32 = arith.constant 0 : i32
    %c0_i32_0 = arith.constant 0 : i32
    %c0_i32_1 = arith.constant 0 : i32
    return %c0_i32, %c0_i32_0 : i32, i32
  }
  func.func @transform_3(%arg0: i32) -> (i32, i32) {
    %c0_i32 = arith.constant 0 : i32
    %c0_i32_0 = arith.constant 0 : i32
    %c0_i32_1 = arith.constant 0 : i32
    return %c0_i32, %c0_i32_0 : i32, i32
  }
  func.func @transform_4(%arg0: i32) -> (i32, i32) {
    %c0_i32 = arith.constant 0 : i32
    %c0_i32_0 = arith.constant 0 : i32
    %c0_i32_1 = arith.constant 0 : i32
    return %c0_i32, %c0_i32_0 : i32, i32
  }
  func.func @transform_5(%arg0: i32) -> (i32, i32) {
    %c0_i32 = arith.constant 0 : i32
    %c0_i32_0 = arith.constant 0 : i32
    %c0_i32_1 = arith.constant 0 : i32
    return %c0_i32, %c0_i32_0 : i32, i32
  }
  func.func @transform_6(%arg0: i32) -> (i32, i32) {
    %c0_i32 = arith.constant 0 : i32
    %c0_i32_0 = arith.constant 0 : i32
    %c0_i32_1 = arith.constant 0 : i32
    return %c0_i32, %c0_i32_0 : i32, i32
  }
  func.func @transform_7(%arg0: i32) -> (i32, i32) {
    %c0_i32 = arith.constant 0 : i32
    %c0_i32_0 = arith.constant 0 : i32
    %c0_i32_1 = arith.constant 0 : i32
    return %c0_i32, %c0_i32_0 : i32, i32
  }
  func.func @transform_8(%arg0: i32) -> (i32, i32) {
    %c0_i32 = arith.constant 0 : i32
    %c0_i32_0 = arith.constant 0 : i32
    %c0_i32_1 = arith.constant 0 : i32
    return %c0_i32, %c0_i32_0 : i32, i32
  }
  func.func @transform_9(%arg0: i32) -> (i32, i32) {
    %c0_i32 = arith.constant 0 : i32
    %c0_i32_0 = arith.constant 0 : i32
    return %arg0, %c0_i32 : i32, i32
  }
  func.func @transform_10(%arg0: i32) -> (i32, i32) {
    %c0_i32 = arith.constant 0 : i32
    %c0_i32_0 = arith.constant 0 : i32
    return %arg0, %c0_i32 : i32, i32
  }
  func.func @transform_11(%arg0: i32) -> (i32, i32) {
    %c0_i32 = arith.constant 0 : i32
    %c0_i32_0 = arith.constant 0 : i32
    return %arg0, %c0_i32 : i32, i32
  }
}

</mosaic_0001>

<bundles_post_ra>
// kernel: vae_forward.1
= control target key start
LH: loop header
LB: loop body
LE: loop exit
PB: predicated region body
PF: predicated region fallthrough
CT: control target
= control target key end

     0   :  { %s2584_s17 = smov 0   ;;  %s3013_s0 = inlined_call_operand.vmem [shape: bf16[256,256], index: 0, kind: input, shape index: {}]   ;;  %s3014_s1 = inlined_call_operand.vmem [shape: bf16[256,128], index: 1, kind: input, shape index: {}]   ;;  %s3015_s2 = inlined_call_operand.vmem [shape: f32[1,128], index: 2, kind: input, shape index: {}]   ;;  %s3016_s3 = inlined_call_operand.vmem [shape: bf16[128,128], index: 3, kind: input, shape index: {}]   ;;  %s3017_s4 = inlined_call_operand.vmem [shape: f32[1,128], index: 4, kind: input, shape index: {}]   ;;  %s3018_s5 = inlined_call_operand.vmem [shape: bf16[64,128], index: 5, kind: input, shape index: {}]   ;;  %s3019_s6 = inlined_call_operand.vmem [shape: f32[1,128], index: 6, kind: input, shape index: {}]   ;;  %s3020_s7 = inlined_call_operand.vmem [shape: bf16[128,256], index: 7, kind: input, shape index: {}]   ;;  %s3021_s8 = inlined_call_operand.vmem [shape: f32[1,256], index: 8, kind: input, shape index: {}]   ;;  %s3022_s9 = inlined_call_operand.vmem [shape: f32[256,64], index: 9, kind: input, shape index: {}]   ;;  %s3023_s10 = inlined_call_operand.vmem [shape: bf16[256,256], index: 10, kind: output, shape index: {0}]   ;;  %s3024_s11 = inlined_call_operand.vmem [shape: f32[256,128], index: 11, kind: output, shape index: {1}]  }
   0x1 LB: > { %s1950_s18 = sadd.s32 4294967295, %s2520_s17   ;;  %p1954_p0 = scmp.ge.s32.totalorder %s2520_s17, 1  ;;  %s2520_s17 = sphi %s2584_s17, %s22_s17  }
   0x2   : > { %p353_p1 = scmp.lt.s32.totalorder %s2520_s17, 3 }
   0x4   : > { %p354_p2 = pnand %p1954_p0, %p353_p1 }
   0x5   : > { %v2278_v0 = vld [vmem:[%s3014_s1 + $0x40] sm:$0xff] (!%p354_p2)   ;;  %s1955_s21 = sshll.u32 (!%p354_p2), %s1950_s18, 4  ;;  %v2280_v2 = vld [vmem:[%s3014_s1 + $0x48] sm:$0xff] (!%p354_p2)   ;;  %v2282_v4 = vld [vmem:[%s3014_s1 + $0x50] sm:$0xff] (!%p354_p2)   ;;  %s2522_s16 = smov (!%p354_p2), 64   ;;  %vm1159_vm0 = vcmask (!%p354_p2), 523264  }
   0x6   : > { %357 = sbr.rel (%p354_p2) target bundleno = 1151 (0x47f), region = 60  ;;  %v2279_v1 = vld [vmem:[%s3014_s1] sm:$0xff] (!%p354_p2)   ;;  %2104 = vmatprep.subr.bf16.mxu0 (!%p354_p2), %v2278_v0  ;;  %2252 = vmatprep.subr.bf16.mxu1 (!%p354_p2), %v2278_v0  ;;  %v2281_v3 = vld [vmem:[%s3014_s1 + $0x8] sm:$0xff] (!%p354_p2)   ;;  %p406_p3 = scmp.lt.s32.totalorder (!%p354_p2), %s1955_s21, 31  ;;  %v2283_v5 = vld [vmem:[%s3014_s1 + $0x10] sm:$0xff] (!%p354_p2)  }
   0x7   : > { %2105 = vmatpush3.bf16.msra.mxu0 (!%p354_p2), %v2279_v1  ;;  %2260 = vmatpush3.bf16.msra.mxu1 (!%p354_p2), %v2279_v1  ;;  %v2284_v6 = vld [vmem:[%s3014_s1 + $0x58] sm:$0xff] (!%p354_p2)   ;;  %v2286_v8 = vld [vmem:[%s3014_s1 + $0x60] sm:$0xff] (!%p354_p2)   ;;  %v2288_v10 = vld [vmem:[%s3014_s1 + $0x68] sm:$0xff] (!%p354_p2)  }
   0x8   : > { %2106 = vmatprep.subr.bf16.mxu0 (!%p354_p2), %v2280_v2  ;;  %2253 = vmatprep.subr.bf16.mxu1 (!%p354_p2), %v2280_v2  ;;  %v2285_v7 = vld [vmem:[%s3014_s1 + $0x18] sm:$0xff] (!%p354_p2)   ;;  %v2287_v9 = vld [vmem:[%s3014_s1 + $0x20] sm:$0xff] (!%p354_p2)   ;;  %v2289_v12 = vld [vmem:[%s3014_s1 + $0x28] sm:$0xff] (!%p354_p2)  }
   0x9   : > { %v2290_v13 = vld [vmem:[%s3014_s1 + $0x70] sm:$0xff] (!%p354_p2)   ;;  %v2292_v16 = vld [vmem:[%s3014_s1 + $0x78] sm:$0xff] (!%p354_p2)   ;;  %v2318_v21 = vld [vmem:[%s3016_s3] sm:$0xff] (!%p354_p2)  }
   0xa   : > { %v2291_v15 = vld [vmem:[%s3014_s1 + $0x30] sm:$0xff] (!%p354_p2)   ;;  %v2293_v17 = vld [vmem:[%s3014_s1 + $0x38] sm:$0xff] (!%p354_p2)   ;;  %v2319_v23 = vld [vmem:[%s3016_s3 + $0x8] sm:$0xff] (!%p354_p2)  }
   0xb   : > { %2107 = vmatpush3.bf16.msra.mxu0 (!%p354_p2), %v2281_v3  ;;  %2261 = vmatpush3.bf16.msra.mxu1 (!%p354_p2), %v2281_v3  ;;  %v2320_v24 = vld [vmem:[%s3016_s3 + $0x10] sm:$0xff] (!%p354_p2)   ;;  %v2321_v35 = vld [vmem:[%s3016_s3 + $0x18] sm:$0xff] (!%p354_p2)   ;;  %v2322_v36 = vld [vmem:[%s3016_s3 + $0x20] sm:$0xff] (!%p354_p2)  }
   0xc   : > { %2108 = vmatprep.subr.bf16.mxu0 (!%p354_p2), %v2282_v4  ;;  %2254 = vmatprep.subr.bf16.mxu1 (!%p354_p2), %v2282_v4  ;;  %v2323_v37 = vld [vmem:[%s3016_s3 + $0x28] sm:$0xff] (!%p354_p2)   ;;  %v2324_v38 = vld [vmem:[%s3016_s3 + $0x30] sm:$0xff] (!%p354_p2)   ;;  %v2325_v39 = vld [vmem:[%s3016_s3 + $0x38] sm:$0xff] (!%p354_p2)  }
   0xd   : > { %s3026_s21 = smov (!%p406_p3, %s1955_s21), 31  ;;  %v2691_v41 = vld [vmem:[%s3015_s2] ss:$0 sm:$0xff] }
   0xe   : > { %s2616_s18 = sshll.u32 %s3026_s21, 3 }
   0xf   : > { %2109 = vmatpush3.bf16.msra.mxu0 %v2283_v5  ;;  %2262 = vmatpush3.bf16.msra.mxu1 %v2283_v5  ;;  %s2625_s24 = scalar_lea.vmem %s3013_s0, %s2616_s18  ;;  %s2727_s14 = scalar_lea.vmem %s3024_s11, %s2616_s18 }
  0x10   : > { %2110 = vmatprep.subr.bf16.mxu0 %v2284_v6  ;;  %2255 = vmatprep.subr.bf16.mxu1 %v2284_v6  ;;  %v2296_v11 = vld [vmem:[%s2625_s24 + $0x4] ss:$8 sps:$4 sm:$0xff]   ;;  %v2294_v18 = vld [vmem:[%s2625_s24] ss:$8 sps:$4 sm:$0xff]   ;;  %v2297_v19 = vld [vmem:[%s2625_s24 + $0x14] ss:$8 sps:$4 sm:$0xff]   ;;  %s2884_s29 = scalar_lea.vmem %s3022_s9, %s2616_s18  ;;  %s2975_s27 = scalar_lea.vmem %s3023_s10, %s2616_s18 }
  0x11   : > { %695 = vmatprep.mubr.bf16.mxu0 %v2296_v11  ;;  %v2304_v14 = vld [vmem:[%s2625_s24 + $0x44] ss:$8 sps:$4 sm:$0xff]   ;;  %v2302_v20 = vld [vmem:[%s2625_s24 + $0x40] ss:$8 sps:$4 sm:$0xff]   ;;  %v2308_v22 = vld [vmem:[%s2625_s24 + $0x54] ss:$8 sps:$4 sm:$0xff]  }
  0x12   : > { %727 = vmatprep.mubr.bf16.mxu1 %v2304_v14  ;;  %v2299_v25 = vld [vmem:[%s2625_s24 + $0x10] ss:$8 sps:$4 sm:$0xff]   ;;  %v2300_v26 = vld [vmem:[%s2625_s24 + $0x24] ss:$8 sps:$4 sm:$0xff]   ;;  %v2305_v29 = vld [vmem:[%s2625_s24 + $0x20] ss:$8 sps:$4 sm:$0xff]  }
  0x13   : > { %2111 = vmatpush3.bf16.msra.mxu0 %v2285_v7  ;;  %2263 = vmatpush3.bf16.msra.mxu1 %v2285_v7  ;;  %v2311_v27 = vld [vmem:[%s2625_s24 + $0x50] ss:$8 sps:$4 sm:$0xff]   ;;  %v2312_v28 = vld [vmem:[%s2625_s24 + $0x64] ss:$8 sps:$4 sm:$0xff]   ;;  %v2306_v30 = vld [vmem:[%s2625_s24 + $0x34] ss:$8 sps:$4 sm:$0xff]  }
  0x14   : > { %2112 = vmatprep.subr.bf16.mxu0 %v2286_v8  ;;  %2256 = vmatprep.subr.bf16.mxu1 %v2286_v8  ;;  %v2314_v31 = vld [vmem:[%s2625_s24 + $0x60] ss:$8 sps:$4 sm:$0xff]   ;;  %v2315_v32 = vld [vmem:[%s2625_s24 + $0x74] ss:$8 sps:$4 sm:$0xff]   ;;  %v2310_v33 = vld [vmem:[%s2625_s24 + $0x30] ss:$8 sps:$4 sm:$0xff]  }
  0x15   : > { %v2317_v34 = vld [vmem:[%s2625_s24 + $0x70] ss:$8 sps:$4 sm:$0xff]  }
  0x17   : > { %2113 = vmatpush3.bf16.msra.mxu0 %v2287_v9  ;;  %2264 = vmatpush3.bf16.msra.mxu1 %v2287_v9 }
  0x18   : > { %2114 = vmatprep.subr.bf16.mxu0 %v2288_v10  ;;  %2257 = vmatprep.subr.bf16.mxu1 %v2288_v10 }
  0x1b   : > { %2115 = vmatpush3.bf16.msra.mxu0 %v2289_v12  ;;  %2265 = vmatpush3.bf16.msra.mxu1 %v2289_v12 }
  0x1c   : > { %2116 = vmatprep.subr.bf16.mxu0 %v2290_v13  ;;  %2258 = vmatprep.subr.bf16.mxu1 %v2290_v13 }
  0x1f   : > { %2117 = vmatpush3.bf16.msra.mxu0 %v2291_v15  ;;  %2266 = vmatpush3.bf16.msra.mxu1 %v2291_v15 }
  0x20   : > { %2118 = vmatprep.subr.bf16.mxu0 %v2292_v16  ;;  %2259 = vmatprep.subr.bf16.mxu1 %v2292_v16 }
  0x23   : > { %2119 = vmatpush3.bf16.msra.mxu0 %v2293_v17  ;;  %2267 = vmatpush3.bf16.msra.mxu1 %v2293_v17 }
  0x24   : > { %2196 = vmatprep.subr.bf16.mxu1 %v2318_v21 }
  0x26   : > { %696 = vmatmul.mubr.bf16.vlgmr.msra.gmra.mrb[0].mxu0 %v2294_v18  ;;  %728 = vmatmul.mubr.bf16.vlgmr.msra.gmra.mrb[0].mxu1 %v2302_v20 }
  0x27   : > { %703 = vmatprep.mubr.bf16.mxu0 %v2297_v19  ;;  %735 = vmatprep.mubr.bf16.mxu1 %v2308_v22 }
  0x28   : > { %2197 = vmatpush3.bf16.msra.mxu1 %v2318_v21 }
  0x29   : > { %2198 = vmatprep.subr.bf16.mxu1 %v2319_v23 }
  0x2c   : > { %2199 = vmatpush3.bf16.msra.mxu1 %v2319_v23 }
  0x2d   : > { %2200 = vmatprep.subr.bf16.mxu1 %v2320_v24 }
  0x2e   : > { %704 = vmatmul.mubr.bf16.gmra.mrb[4].mxu0 %v2299_v25  ;;  %736 = vmatmul.mubr.bf16.gmra.mrb[4].mxu1 %v2311_v27 }
  0x2f   : > { %711 = vmatprep.mubr.bf16.mxu0 %v2300_v26  ;;  %743 = vmatprep.mubr.bf16.mxu1 %v2312_v28 }
  0x30   : > { %2201 = vmatpush3.bf16.msra.mxu1 %v2320_v24 }
  0x31   : > { %2202 = vmatprep.subr.bf16.mxu1 %v2321_v35 }
  0x34   : > { %2203 = vmatpush3.bf16.msra.mxu1 %v2321_v35 }
  0x35   : > { %2204 = vmatprep.subr.bf16.mxu1 %v2322_v36 }
  0x36   : > { %712 = vmatmul.mubr.bf16.gmra.mrb[8].mxu0 %v2305_v29  ;;  %744 = vmatmul.mubr.bf16.gmra.mrb[8].mxu1 %v2314_v31 }
  0x37   : > { %719 = vmatprep.mubr.bf16.mxu0 %v2306_v30  ;;  %751 = vmatprep.mubr.bf16.mxu1 %v2315_v32 }
  0x38   : > { %2205 = vmatpush3.bf16.msra.mxu1 %v2322_v36 }
  0x39   : > { %2206 = vmatprep.subr.bf16.mxu1 %v2323_v37 }
  0x3c   : > { %2207 = vmatpush3.bf16.msra.mxu1 %v2323_v37 }
  0x3d   : > { %2208 = vmatprep.subr.bf16.mxu1 %v2324_v38 }
  0x3e   : > { %720 = vmatmul.mubr.bf16.gmra.mrb[12].mxu0 %v2310_v33  ;;  %752 = vmatmul.mubr.bf16.gmra.mrb[12].mxu1 %v2317_v34 }
  0x40   : > { %2209 = vmatpush3.bf16.msra.mxu1 %v2324_v38 }
  0x41   : > { %2210 = vmatprep.subr.bf16.mxu1 %v2325_v39 }
  0x44   : > { %2211 = vmatpush3.bf16.msra.mxu1 %v2325_v39 }
  0xf9   : > { %v2120_v40 = vpop.f32.mrb[0].mxu0  ;;  %v2144_v43 = vpop.f32.mrb[0].mxu1 }
  0xfa   : > { %v2121_v42 = vpop.f32.mrb[1].mxu0  ;;  %v2145_v46 = vpop.f32.mrb[1].mxu1 }
  0xfb   : > { %v2122_v44 = vadd.f32 %v2121_v42, %v2120_v40  ;;  %v2123_v45 = vpop.f32.mrb[2].mxu0  ;;  %v2146_v48 = vadd.f32 %v2145_v46, %v2144_v43  ;;  %v2147_v49 = vpop.f32.mrb[2].mxu1 }
  0xfc   : > { %v2124_v47 = vpop.f32.mrb[3].mxu0  ;;  %v2148_v52 = vpop.f32.mrb[3].mxu1 }
  0xfd   : > { %v698_v50 = vadd.f32 %v2122_v44, %v2691_v41  ;;  %v2125_v51 = vadd.f32 %v2124_v47, %v2123_v45  ;;  %v730_v53 = vadd.f32 %v2146_v48, %v2691_v41  ;;  %v2149_v54 = vadd.f32 %v2148_v52, %v2147_v49 }
  0xff   : > { %v701_v55 = vadd.f32 %v2125_v51, %v2691_v41  ;;  %v768_v56 = vmax.f32 %v730_v53, 0.0  ;;  %v733_v57 = vadd.f32 %v2149_v54, %v2691_v41  ;;  %v760_v58 = vmax.f32 %v698_v50, 0.0 }
 0x101   : > { %v761_v59 = vmax.f32 %v701_v55, 0.0  ;;  %v2126_v60 = vpop.f32.mrb[4].mxu0  ;;  %v769_v62 = vmax.f32 %v733_v57, 0.0  ;;  %v2150_v63 = vpop.f32.mrb[4].mxu1 }
 0x102   : > { %v2127_v61 = vpop.f32.mrb[5].mxu0  ;;  %v2151_v3 = vpop.f32.mrb[5].mxu1 }
 0x103   : > { %v2128_v0 = vadd.f32 %v2127_v61, %v2126_v60  ;;  %v2129_v1 = vpop.f32.mrb[6].mxu0  ;;  %v776_v2 = vpack.c.bf16 %v761_v59, %v760_v58  ;;  %v2152_v5 = vadd.f32 %v2151_v3, %v2150_v63  ;;  %v2153_v6 = vpop.f32.mrb[6].mxu1  ;;  %v780_v7 = vpack.c.bf16 %v769_v62, %v768_v56  ;;  %v2327_v3 = vld [vmem:[%s3018_s5 + $0x8] sm:$0xff]  }
 0x104   : > { %v2130_v4 = vpop.f32.mrb[7].mxu0  ;;  %v2154_v10 = vpop.f32.mrb[7].mxu1 }
 0x105   : > { %v706_v8 = vadd.f32 %v2128_v0, %v2691_v41  ;;  %v2131_v9 = vadd.f32 %v2130_v4, %v2129_v1  ;;  %2212 = vmatprep.mubr.bf16.mxu1 %v776_v2  ;;  %v738_v11 = vadd.f32 %v2152_v5, %v2691_v41  ;;  %v2155_v12 = vadd.f32 %v2154_v10, %v2153_v6  ;;  %v2326_v2 = vld [vmem:[%s3018_s5] sm:$0xff]  }
 0x106   : > { %2228 = vmatprep.subr.bf16.mxu1 %v2326_v2  ;;  %v2721_v4 = vld [vmem:[%s3017_s4] ss:$0 sm:$0xff] }
 0x107   : > { %v709_v13 = vadd.f32 %v2131_v9, %v2691_v41  ;;  %v770_v14 = vmax.f32 %v738_v11, 0.0  ;;  %v741_v15 = vadd.f32 %v2155_v12, %v2691_v41  ;;  %v762_v16 = vmax.f32 %v706_v8, 0.0 }
 0x109   : > { %v763_v17 = vmax.f32 %v709_v13, 0.0  ;;  %v2132_v18 = vpop.f32.mrb[8].mxu0  ;;  %v771_v20 = vmax.f32 %v741_v15, 0.0  ;;  %v2156_v21 = vpop.f32.mrb[8].mxu1 }
 0x10a   : > { %v2133_v19 = vpop.f32.mrb[9].mxu0  ;;  %v2157_v25 = vpop.f32.mrb[9].mxu1 }
 0x10b   : > { %v777_v22 = vpack.c.bf16 %v763_v17, %v762_v16  ;;  %v2134_v23 = vadd.f32 %v2133_v19, %v2132_v18  ;;  %v2135_v24 = vpop.f32.mrb[10].mxu0  ;;  %v2158_v27 = vadd.f32 %v2157_v25, %v2156_v21  ;;  %v2159_v28 = vpop.f32.mrb[10].mxu1  ;;  %v781_v29 = vpack.c.bf16 %v771_v20, %v770_v14  ;;  %v2329_v21 = vld [vmem:[%s3018_s5 + $0x18] sm:$0xff]  }
 0x10c   : > { %v2136_v26 = vpop.f32.mrb[11].mxu0  ;;  %v2160_v32 = vpop.f32.mrb[11].mxu1 }
 0x10d   : > { %v714_v30 = vadd.f32 %v2134_v23, %v2691_v41  ;;  %v2137_v31 = vadd.f32 %v2136_v26, %v2135_v24  ;;  %2213 = vmatmul.mubr.bf16.vlgmr.msra.gmra.mrb[16].mxu1 %v777_v22  ;;  %v746_v33 = vadd.f32 %v2158_v27, %v2691_v41  ;;  %v2161_v34 = vadd.f32 %v2160_v32, %v2159_v28 }
 0x10e   : > { %2229 = vmatpush3.bf16.msra.mxu1 %v2326_v2 }
 0x10f   : > { %v717_v35 = vadd.f32 %v2137_v31, %v2691_v41  ;;  %v772_v36 = vmax.f32 %v746_v33, 0.0  ;;  %v749_v37 = vadd.f32 %v2161_v34, %v2691_v41  ;;  %v764_v38 = vmax.f32 %v714_v30, 0.0  ;;  %2230 = vmatprep.subr.bf16.mxu1 %v2327_v3 }
 0x111   : > { %v765_v39 = vmax.f32 %v717_v35, 0.0  ;;  %v2138_v40 = vpop.f32.mrb[12].mxu0  ;;  %v773_v43 = vmax.f32 %v749_v37, 0.0  ;;  %v2162_v44 = vpop.f32.mrb[12].mxu1 }
 0x112   : > { %v2139_v42 = vpop.f32.mrb[13].mxu0  ;;  %v2163_v48 = vpop.f32.mrb[13].mxu1  ;;  %2231 = vmatpush3.bf16.msra.mxu1 %v2327_v3 }
 0x113   : > { %v2140_v45 = vadd.f32 %v2139_v42, %v2138_v40  ;;  %v2141_v46 = vpop.f32.mrb[14].mxu0  ;;  %v778_v47 = vpack.c.bf16 %v765_v39, %v764_v38  ;;  %v2164_v50 = vadd.f32 %v2163_v48, %v2162_v44  ;;  %v2165_v51 = vpop.f32.mrb[14].mxu1  ;;  %v782_v52 = vpack.c.bf16 %v773_v43, %v772_v36 }
 0x114   : > { %v2142_v49 = vpop.f32.mrb[15].mxu0  ;;  %v2166_v55 = vpop.f32.mrb[15].mxu1 }
 0x115   : > { %v722_v53 = vadd.f32 %v2140_v45, %v2691_v41  ;;  %v2143_v54 = vadd.f32 %v2142_v49, %v2141_v46  ;;  %2216 = vmatprep.mubr.bf16.mxu1 %v778_v47  ;;  %v754_v56 = vadd.f32 %v2164_v50, %v2691_v41  ;;  %v2167_v57 = vadd.f32 %v2166_v55, %v2165_v51 }
 0x117   : > { %v725_v58 = vadd.f32 %v2143_v54, %v2691_v41  ;;  %v774_v59 = vmax.f32 %v754_v56, 0.0  ;;  %v757_v60 = vadd.f32 %v2167_v57, %v2691_v41  ;;  %v766_v61 = vmax.f32 %v722_v53, 0.0  ;;  %v2328_v41 = vld [vmem:[%s3018_s5 + $0x10] sm:$0xff]  }
 0x118   : > { %2232 = vmatprep.subr.bf16.mxu1 %v2328_v41 }
 0x119   : > { %v767_v62 = vmax.f32 %v725_v58, 0.0  ;;  %v775_v63 = vmax.f32 %v757_v60, 0.0  ;;  %2233 = vmatpush3.bf16.msra.mxu1 %v2328_v41 }
 0x11a   : > { %2234 = vmatprep.subr.bf16.mxu1 %v2329_v21 }
 0x11b   : > { %v779_v0 = vpack.c.bf16 %v767_v62, %v766_v61  ;;  %v783_v1 = vpack.c.bf16 %v775_v63, %v774_v59 }
 0x11d   : > { %2217 = vmatmul.mubr.bf16.gmra.mrb[20].mxu1 %v779_v0 }
 0x11e   : > { %2220 = vmatprep.mubr.bf16.mxu1 %v780_v7  ;;  %2235 = vmatpush3.bf16.msra.mxu1 %v2329_v21 }
 0x125   : > { %2221 = vmatmul.mubr.bf16.gmra.mrb[24].mxu1 %v781_v29 }
 0x126   : > { %2224 = vmatprep.mubr.bf16.mxu1 %v782_v52 }
 0x12d   : > { %2225 = vmatmul.mubr.bf16.gmra.mrb[28].mxu1 %v783_v1 }
 0x1e0   : > { %v2214_v5 = vpop.f32.mrb[16].mxu1 }
 0x1e1   : > { %v2730_v6 = vadd.f32 %v2214_v5, %v2721_v4  ;;  %v889_v7 = vpop.f32.mrb[17].mxu1 }
 0x1e2   : > { %v2733_v8 = vadd.f32 %v2721_v4, %v889_v7  ;;  %v2215_v9 = vpop.f32.mrb[18].mxu1 }
 0x1e3   : > { %v954_v10 = vmul.f32 0.5, %v2730_v6  ;;  %1832 = vst [vmem:[%s2727_s14 + $0x10] sm:$0xff] %v2730_v6  ;;  %v2739_v11 = vadd.f32 %v2215_v9, %v2721_v4  ;;  %v892_v12 = vpop.f32.mrb[19].mxu1 }
 0x1e4   : > { %v952_v13 = vmul.f32 0.5, %v2733_v8  ;;  %1830 = vst [vmem:[%s2727_s14] sm:$0xff] %v2733_v8  ;;  %v2745_v14 = vadd.f32 %v2721_v4, %v892_v12 }
 0x1e5   : > { %v972_v15 = vmul.f32 1.442695, %v954_v10  ;;  %v955_v16 = vmul.f32 0.5, %v2739_v11  ;;  %1833 = vst [vmem:[%s2727_s14 + $0x18] sm:$0xff] %v2739_v11 }
 0x1e6   : > { %v968_v17 = vmul.f32 1.442695, %v952_v13  ;;  %v953_v18 = vmul.f32 0.5, %v2745_v14  ;;  %1831 = vst [vmem:[%s2727_s14 + $0x8] sm:$0xff] %v2745_v14 }
 0x1e7   : > { %2354 = vpow2.f32 %v972_v15  ;;  %v974_v19 = vmul.f32 1.442695, %v955_v16 }
 0x1e8   : > { %2356 = vpow2.f32 %v968_v17  ;;  %v970_v20 = vmul.f32 1.442695, %v953_v18 }
 0x1e9   : > { %2358 = vpow2.f32 %v974_v19 }
 0x1ea   : > { %2360 = vpow2.f32 %v970_v20 }
 0x1f0   : > { %v2218_v22 = vpop.f32.mrb[20].mxu1 }
 0x1f1   : > { %v2355_v23 = vpop.eup %2354  ;;  %v2757_v24 = vadd.f32 %v2218_v22, %v2721_v4  ;;  %v905_v25 = vpop.f32.mrb[21].mxu1 }
 0x1f2   : > { %v2357_v26 = vpop.eup %2356  ;;  %v2760_v27 = vadd.f32 %v2721_v4, %v905_v25  ;;  %1036 = vrot.lane.b32.xlu1 %v2355_v23, %s2522_s16  ;;  %v2219_v28 = vpop.f32.mrb[22].mxu1  ;;  %v2330_v23 = vld [vmem:[%s3020_s7] ss:$8 sps:$4 sm:$0xff]   ;;  %v2332_v25 = vld [vmem:[%s3020_s7 + $0x4] ss:$8 sps:$4 sm:$0xff]  }
 0x1f3   : > { %1836 = vst [vmem:[%s2727_s14 + $0x30] sm:$0xff] %v2757_v24  ;;  %v2766_v29 = vadd.f32 %v2219_v28, %v2721_v4  ;;  %v908_v30 = vpop.f32.mrb[23].mxu1  ;;  %1032 = vrot.lane.b32.xlu0 %v2357_v26, %s2522_s16  ;;  %v958_v31 = vmul.f32 0.5, %v2757_v24  ;;  %v2359_v34 = vpop.eup %2358  ;;  %v2335_v28 = vld [vmem:[%s3020_s7 + $0x14] ss:$8 sps:$4 sm:$0xff]   ;;  %1413 = vmatprep.subr.bf16.mxu0 %v2332_v25 }
 0x1f4   : > { %v956_v32 = vmul.f32 0.5, %v2760_v27  ;;  %1834 = vst [vmem:[%s2727_s14 + $0x20] sm:$0xff] %v2760_v27  ;;  %v2774_v33 = vadd.f32 %v2721_v4, %v908_v30  ;;  %v2361_v35 = vpop.eup %2360  ;;  %1414 = vmatpush1.bf16.msra.mxu0 %v2330_v23 }
 0x1f5   : > { %1837 = vst [vmem:[%s2727_s14 + $0x38] sm:$0xff] %v2766_v29  ;;  %v959_v37 = vmul.f32 0.5, %v2766_v29  ;;  %v980_v39 = vmul.f32 1.442695, %v958_v31  ;;  %v2333_v31 = vld [vmem:[%s3020_s7 + $0x10] ss:$8 sps:$4 sm:$0xff]   ;;  %1415 = vmatprep.subr.bf16.mxu0 %v2335_v28 }
 0x1f6   : > { %v976_v36 = vmul.f32 1.442695, %v956_v32  ;;  %v957_v38 = vmul.f32 0.5, %v2774_v33  ;;  %1835 = vst [vmem:[%s2727_s14 + $0x28] sm:$0xff] %v2774_v33  ;;  %1038 = vrot.lane.b32.xlu1 %v2359_v34, %s2522_s16  ;;  %v2338_v34 = vld [vmem:[%s3020_s7 + $0x24] ss:$8 sps:$4 sm:$0xff]  }
 0x1f7   : > { %1034 = vrot.lane.b32.xlu0 %v2361_v35, %s2522_s16  ;;  %v982_v45 = vmul.f32 1.442695, %v959_v37  ;;  %v2336_v35 = vld [vmem:[%s3020_s7 + $0x20] ss:$8 sps:$4 sm:$0xff]   ;;  %v2339_v37 = vld [vmem:[%s3020_s7 + $0x30] ss:$8 sps:$4 sm:$0xff]  }
 0x1f8   : > { %2362 = vpow2.f32 %v976_v36  ;;  %v978_v40 = vmul.f32 1.442695, %v957_v38  ;;  %v2222_v42 = vpop.f32.mrb[24].mxu1  ;;  %1416 = vmatpush1.bf16.msra.mxu0 %v2333_v31  ;;  %v2341_v36 = vld [vmem:[%s3020_s7 + $0x34] ss:$8 sps:$4 sm:$0xff]  }
 0x1f9   : > { %v2785_v43 = vadd.f32 %v2222_v42, %v2721_v4  ;;  %v921_v44 = vpop.f32.mrb[25].mxu1  ;;  %1417 = vmatprep.subr.bf16.mxu0 %v2338_v34  ;;  %v2344_v38 = vld [vmem:[%s3020_s7 + $0x44] ss:$8 sps:$4 sm:$0xff]   ;;  %v2345_v42 = vld [vmem:[%s3020_s7 + $0x50] ss:$8 sps:$4 sm:$0xff]  }
 0x1fa   : > { %2364 = vpow2.f32 %v978_v40  ;;  %v2788_v46 = vadd.f32 %v2721_v4, %v921_v44  ;;  %v2223_v47 = vpop.f32.mrb[26].mxu1  ;;  %v2347_v40 = vld [vmem:[%s3020_s7 + $0x54] ss:$8 sps:$4 sm:$0xff]  }
 0x1fb   : > { %v962_v48 = vmul.f32 0.5, %v2785_v43  ;;  %1840 = vst [vmem:[%s2727_s14 + $0x50] sm:$0xff] %v2785_v43  ;;  %v2794_v49 = vadd.f32 %v2223_v47, %v2721_v4  ;;  %v924_v50 = vpop.f32.mrb[27].mxu1  ;;  %2366 = vpow2.f32 %v980_v39  ;;  %v2342_v39 = vld [vmem:[%s3020_s7 + $0x40] ss:$8 sps:$4 sm:$0xff]   ;;  %v1011_v31 = vld [vmem:[%s2884_s29 + $0x58] sm:$0xff] }
 0x1fc   : > { %v960_v51 = vmul.f32 0.5, %v2788_v46  ;;  %1838 = vst [vmem:[%s2727_s14 + $0x40] sm:$0xff] %v2788_v46  ;;  %v2800_v52 = vadd.f32 %v2721_v4, %v924_v50  ;;  %2368 = vpow2.f32 %v982_v45  ;;  %1418 = vmatpush1.bf16.msra.mxu0 %v2336_v35  ;;  %v1000_v45 = vld [vmem:[%s2884_s29] sm:$0xff]  ;;  %v1003_v50 = vld [vmem:[%s2884_s29 + $0x18] sm:$0xff] }
 0x1fd   : > { %v988_v53 = vmul.f32 1.442695, %v962_v48  ;;  %1841 = vst [vmem:[%s2727_s14 + $0x58] sm:$0xff] %v2794_v49  ;;  %v963_v55 = vmul.f32 0.5, %v2794_v49  ;;  %1419 = vmatprep.subr.bf16.mxu0 %v2341_v36  ;;  %v1002_v48 = vld [vmem:[%s2884_s29 + $0x10] sm:$0xff] }
 0x1fe   : > { %v984_v54 = vmul.f32 1.442695, %v960_v51  ;;  %v961_v56 = vmul.f32 0.5, %v2800_v52  ;;  %1839 = vst [vmem:[%s2727_s14 + $0x48] sm:$0xff] %v2800_v52  ;;  %v1001_v51 = vld [vmem:[%s2884_s29 + $0x8] sm:$0xff] }
 0x1ff   : > { %v990_v62 = vmul.f32 1.442695, %v963_v55 }
 0x200   : > { %2370 = vpow2.f32 %v984_v54  ;;  %v986_v57 = vmul.f32 1.442695, %v961_v56  ;;  %v2226_v58 = vpop.f32.mrb[28].mxu1  ;;  %1420 = vmatpush1.bf16.msra.mxu0 %v2339_v37 }
 0x201   : > { %2372 = vpow2.f32 %v988_v53  ;;  %v2809_v59 = vadd.f32 %v2226_v58, %v2721_v4  ;;  %v937_v60 = vpop.f32.mrb[29].mxu1  ;;  %1421 = vmatprep.subr.bf16.mxu0 %v2344_v38 }
 0x202   : > { %v2363_v61 = vpop.eup %2362  ;;  %2374 = vpow2.f32 %v986_v57  ;;  %v2812_v63 = vadd.f32 %v2721_v4, %v937_v60  ;;  %v2227_v0 = vpop.f32.mrb[30].mxu1 }
 0x203   : > { %v966_v1 = vmul.f32 0.5, %v2809_v59  ;;  %1844 = vst [vmem:[%s2727_s14 + $0x70] sm:$0xff] %v2809_v59  ;;  %v2818_v2 = vadd.f32 %v2227_v0, %v2721_v4  ;;  %v940_v3 = vpop.f32.mrb[31].mxu1  ;;  %1040 = vrot.lane.b32.xlu0 %v2363_v61, %s2522_s16  ;;  %2376 = vpow2.f32 %v990_v62 }
 0x204   : > { %v2365_v41 = vpop.eup %2364  ;;  %v964_v5 = vmul.f32 0.5, %v2812_v63  ;;  %1842 = vst [vmem:[%s2727_s14 + $0x60] sm:$0xff] %v2812_v63  ;;  %v2825_v7 = vadd.f32 %v2721_v4, %v940_v3  ;;  %1422 = vmatpush1.bf16.msra.mxu0 %v2342_v39  ;;  %v1013_v39 = vld [vmem:[%s2884_s29 + $0x68] sm:$0xff] }
 0x205   : > { %v996_v9 = vmul.f32 1.442695, %v966_v1  ;;  %v967_v10 = vmul.f32 0.5, %v2818_v2  ;;  %1845 = vst [vmem:[%s2727_s14 + $0x78] sm:$0xff] %v2818_v2  ;;  %1042 = vrot.lane.b32.xlu1 %v2365_v41, %s2522_s16  ;;  %v2367_v12 = vpop.eup %2366  ;;  %1423 = vmatprep.subr.bf16.mxu0 %v2347_v40  ;;  %v1004_v41 = vld [vmem:[%s2884_s29 + $0x20] sm:$0xff] }
 0x206   : > { %v992_v13 = vmul.f32 1.442695, %v964_v5  ;;  %v965_v15 = vmul.f32 0.5, %v2825_v7  ;;  %1843 = vst [vmem:[%s2727_s14 + $0x68] sm:$0xff] %v2825_v7  ;;  %v2369_v16 = vpop.eup %2368 }
 0x207   : > { %1044 = vrot.lane.b32.xlu0 %v2367_v12, %s2522_s16  ;;  %v998_v4 = vmul.f32 1.442695, %v967_v10 }
 0x208   : > { %2378 = vpow2.f32 %v992_v13  ;;  %v994_v17 = vmul.f32 1.442695, %v965_v15  ;;  %1424 = vmatpush1.bf16.msra.mxu0 %v2345_v42 }
 0x209   : > { %2380 = vpow2.f32 %v996_v9  ;;  %1046 = vrot.lane.b32.xlu1 %v2369_v16, %s2522_s16  ;;  %v1005_v9 = vld [vmem:[%s2884_s29 + $0x28] sm:$0xff] }
 0x20a   : > { %v2371_v18 = vpop.eup %2370  ;;  %2382 = vpow2.f32 %v994_v17  ;;  %v1008_v17 = vld [vmem:[%s2884_s29 + $0x40] sm:$0xff] }
 0x20b   : > { %v2373_v19 = vpop.eup %2372  ;;  %1048 = vrot.lane.b32.xlu0 %v2371_v18, %s2522_s16  ;;  %2384 = vpow2.f32 %v998_v4 }
 0x20c   : > { %v2375_v20 = vpop.eup %2374 }
 0x20d   : > { %1050 = vrot.lane.b32.xlu1 %v2375_v20, %s2522_s16  ;;  %v2377_v21 = vpop.eup %2376 }
 0x20f   : > { %1052 = vrot.lane.b32.xlu0 %v2373_v19, %s2522_s16 }
 0x211   : > { %1054 = vrot.lane.b32.xlu1 %v2377_v21, %s2522_s16  ;;  %v1009_v21 = vld [vmem:[%s2884_s29 + $0x48] sm:$0xff] }
 0x212   : > { %v2379_v22 = vpop.eup %2378 }
 0x213   : > { %v2381_v26 = vpop.eup %2380  ;;  %1056 = vrot.lane.b32.xlu0 %v2379_v22, %s2522_s16 }
 0x214   : > { %v2383_v30 = vpop.eup %2382 }
 0x215   : > { %1058 = vrot.lane.b32.xlu1 %v2383_v30, %s2522_s16  ;;  %v2385_v32 = vpop.eup %2384 }
 0x217   : > { %1060 = vrot.lane.b32.xlu0 %v2381_v26, %s2522_s16  ;;  %v1010_v26 = vld [vmem:[%s2884_s29 + $0x50] sm:$0xff] }
 0x219   : > { %1062 = vrot.lane.b32.xlu1 %v2385_v32, %s2522_s16 }
 0x264   : > { %v1037_v44 = vpop.permute.xlu1 %1036 }
 0x265   : > { %v1033_v47 = vpop.permute.xlu0 %1032  ;;  %v1082_v55 = vmul.f32 %v1037_v44, %v1002_v48 }
 0x266   : > { %v1080_v53 = vmul.f32 %v1033_v47, %v1000_v45  ;;  %v1014_v45 = vld [vmem:[%s2884_s29 + $0x70] sm:$0xff] }
 0x267   : > { %v1098_v0 = vadd.f32 %v1082_v55, %v2730_v6 }
 0x268   : > { %v1039_v54 = vpop.permute.xlu1 %1038  ;;  %v1096_v61 = vadd.f32 %v1080_v53, %v2733_v8  ;;  %v1006_v8 = vld [vmem:[%s2884_s29 + $0x30] sm:$0xff] }
 0x269   : > { %v1083_v56 = vmul.f32 %v1039_v54, %v1003_v50  ;;  %v1035_v57 = vpop.permute.xlu0 %1034  ;;  %v1015_v50 = vld [vmem:[%s2884_s29 + $0x78] sm:$0xff] }
 0x26a   : > { %v1081_v58 = vmul.f32 %v1035_v57, %v1001_v51 }
 0x26b   : > { %v1099_v60 = vadd.f32 %v1083_v56, %v2739_v11 }
 0x26c   : > { %v1097_v62 = vadd.f32 %v1081_v58, %v2745_v14  ;;  %v1007_v14 = vld [vmem:[%s2884_s29 + $0x38] sm:$0xff] }
 0x26d   : > { %v1113_v3 = vpack.c.bf16 %v1099_v60, %v1098_v0  ;;  %v2523_v60 = vmov 0  }
 0x26e   : > { %v1112_v1 = vpack.c.bf16 %v1097_v62, %v1096_v61  ;;  %1445 = vmatprep.mubr.bf16.mxu0 %v2523_v60  ;;  %v2007_v61 = vld [vmem:[%s3019_s6] ss:$0 sm:$0xff] }
 0x270   : > { %2236 = vmatprep.mubr.msk.bf16.mxu1 %vm1159_vm0, %v1112_v1 }
 0x271   : > { %2237 = vmatmul.mubr.msk.bf16.vlgmr.msra.gmra.mrb[32].mxu1 %vm1159_vm0, %v1113_v3 }
 0x275   : > { %v1041_v5 = vpop.permute.xlu0 %1040 }
 0x276   : > { %v1084_v11 = vmul.f32 %v1041_v5, %v1004_v41 }
 0x277   : > { %v1043_v10 = vpop.permute.xlu1 %1042 }
 0x278   : > { %v1085_v12 = vmul.f32 %v1043_v10, %v1005_v9  ;;  %v1100_v6 = vadd.f32 %v1084_v11, %v2760_v27 }
 0x279   : > { %v1045_v13 = vpop.permute.xlu0 %1044 }
 0x27a   : > { %v1101_v15 = vadd.f32 %v1085_v12, %v2774_v33  ;;  %v1086_v16 = vmul.f32 %v1045_v13, %v1006_v8 }
 0x27b   : > { %v1047_v4 = vpop.permute.xlu1 %1046 }
 0x27c   : > { %v1114_v18 = vpack.c.bf16 %v1101_v15, %v1100_v6  ;;  %v1087_v19 = vmul.f32 %v1047_v4, %v1007_v14  ;;  %v1102_v22 = vadd.f32 %v1086_v16, %v2757_v24 }
 0x27d   : > { %v1049_v20 = vpop.permute.xlu0 %1048 }
 0x27e   : > { %v1103_v23 = vadd.f32 %v1087_v19, %v2766_v29  ;;  %v1088_v25 = vmul.f32 %v1049_v20, %v1008_v17  ;;  %2240 = vmatprep.mubr.msk.bf16.mxu1 %vm1159_vm0, %v1114_v18  ;;  %v1012_v29 = vld [vmem:[%s2884_s29 + $0x60] sm:$0xff] }
 0x27f   : > { %v1051_v27 = vpop.permute.xlu1 %1050 }
 0x280   : > { %v1115_v33 = vpack.c.bf16 %v1103_v23, %v1102_v22  ;;  %v1089_v28 = vmul.f32 %v1051_v27, %v1009_v21  ;;  %v1104_v32 = vadd.f32 %v1088_v25, %v2788_v46 }
 0x281   : > { %v1053_v30 = vpop.permute.xlu0 %1052 }
 0x282   : > { %v1105_v34 = vadd.f32 %v1089_v28, %v2800_v52  ;;  %v1090_v35 = vmul.f32 %v1053_v30, %v1010_v26  ;;  %2241 = vmatmul.mubr.msk.bf16.gmra.mrb[36].mxu1 %vm1159_vm0, %v1115_v33 }
 0x283   : > { %v1055_v24 = vpop.permute.xlu1 %1054 }
 0x284   : > { %v1116_v36 = vpack.c.bf16 %v1105_v34, %v1104_v32  ;;  %v1091_v37 = vmul.f32 %v1055_v24, %v1011_v31  ;;  %v1106_v40 = vadd.f32 %v1090_v35, %v2785_v43 }
 0x285   : > { %v1057_v38 = vpop.permute.xlu0 %1056 }
 0x286   : > { %v1107_v42 = vadd.f32 %v1091_v37, %v2794_v49  ;;  %v1092_v44 = vmul.f32 %v1057_v38, %v1012_v29  ;;  %2244 = vmatprep.mubr.msk.bf16.mxu1 %vm1159_vm0, %v1116_v36 }
 0x287   : > { %v1059_v46 = vpop.permute.xlu1 %1058 }
 0x288   : > { %v1117_v52 = vpack.c.bf16 %v1107_v42, %v1106_v40  ;;  %v1093_v47 = vmul.f32 %v1059_v46, %v1013_v39  ;;  %v1108_v51 = vadd.f32 %v1092_v44, %v2812_v63  ;;  %v2350_v63 = vld [vmem:[%s3020_s7 + $0x64] ss:$8 sps:$4 sm:$0xff]  }
 0x289   : > { %v1061_v48 = vpop.permute.xlu0 %1060  ;;  %1425 = vmatprep.subr.bf16.mxu0 %v2350_v63 }
 0x28a   : > { %v1109_v53 = vadd.f32 %v1093_v47, %v2825_v7  ;;  %v1094_v54 = vmul.f32 %v1061_v48, %v1014_v45  ;;  %2245 = vmatmul.mubr.msk.bf16.gmra.mrb[40].mxu1 %vm1159_vm0, %v1117_v52  ;;  %v2348_v7 = vld [vmem:[%s3020_s7 + $0x60] ss:$8 sps:$4 sm:$0xff]  }
 0x28b   : > { %v1063_v55 = vpop.permute.xlu1 %1062  ;;  %1426 = vmatpush1.bf16.msra.mxu0 %v2348_v7  ;;  %v1321_v7 = vld [vmem:[%s3021_s8] sm:$0x3] }
 0x28c   : > { %v1118_v43 = vpack.c.bf16 %v1109_v53, %v1108_v51  ;;  %v1095_v56 = vmul.f32 %v1063_v55, %v1015_v50  ;;  %v1110_v49 = vadd.f32 %v1094_v54, %v2809_v59  ;;  %v2353_v59 = vld [vmem:[%s3020_s7 + $0x74] ss:$8 sps:$4 sm:$0xff]  }
 0x28d   : > { %1427 = vmatprep.subr.bf16.mxu0 %v2353_v59 }
 0x28e   : > { %v1111_v57 = vadd.f32 %v1095_v56, %v2818_v2  ;;  %2248 = vmatprep.mubr.msk.bf16.mxu1 %vm1159_vm0, %v1118_v43  ;;  %v2351_v2 = vld [vmem:[%s3020_s7 + $0x70] ss:$8 sps:$4 sm:$0xff]  }
 0x28f   : > { %1428 = vmatpush1.bf16.msra.mxu0 %v2351_v2 }
 0x290   : > { %v1119_v58 = vpack.c.bf16 %v1111_v57, %v1110_v49  ;;  %v1323_v57 = vlaneseq }
 0x292   : > { %2249 = vmatmul.mubr.msk.bf16.gmra.mrb[44].mxu1 %vm1159_vm0, %v1119_v58  ;;  %v1324_v58 = vshrl.u32 %v1323_v57, 7 }
 0x294   : > { %v1325_v63 = vsub.s32 0, %v1324_v58  ;;  %v1329_v59 = vsub.s32 1, %v1324_v58 }
 0x296   : > { %v2952_v2 = vrot.slane %v1321_v7, %v1325_v63 }
 0x344   : > { %v2238_v62 = vpop.f32.mrb[32].mxu1 }
 0x345   : > { %v1227_v0 = vadd.f32 %v2238_v62, %v2007_v61  ;;  %v1218_v1 = vpop.f32.mrb[33].mxu1 }
 0x346   : > { %v1219_v3 = vadd.f32 %v2007_v61, %v1218_v1  ;;  %v2239_v41 = vpop.f32.mrb[34].mxu1 }
 0x347   : > { %v1230_v5 = vadd.f32 %v2239_v41, %v2007_v61  ;;  %v1221_v9 = vpop.f32.mrb[35].mxu1  ;;  %v1283_v10 = vmax.f32 %v1227_v0, 0.0 }
 0x348   : > { %v1222_v11 = vadd.f32 %v2007_v61, %v1221_v9  ;;  %v1281_v12 = vmax.f32 %v1219_v3, 0.0 }
 0x349   : > { %v1284_v8 = vmax.f32 %v1230_v5, 0.0 }
 0x34a   : > { %v1282_v13 = vmax.f32 %v1222_v11, 0.0 }
 0x34b   : > { %v1298_v14 = vpack.c.bf16 %v1284_v8, %v1283_v10 }
 0x34c   : > { %v1297_v6 = vpack.c.bf16 %v1282_v13, %v1281_v12 }
 0x34e   : > { %1446 = vmatmul.mubr.bf16.vlgmr.msra.gmra.mrb[16].mxu0 %v1297_v6 }
 0x34f   : > { %1455 = vmatprep.mubr.bf16.mxu0 %v2523_v60 }
 0x355   : > { %v2242_v15 = vpop.f32.mrb[36].mxu1 }
 0x356   : > { %v1243_v16 = vadd.f32 %v2242_v15, %v2007_v61  ;;  %v1234_v4 = vpop.f32.mrb[37].mxu1  ;;  %1456 = vmatmul.mubr.bf16.gmra.mrb[20].mxu0 %v1298_v14 }
 0x357   : > { %v1235_v17 = vadd.f32 %v2007_v61, %v1234_v4  ;;  %v2243_v18 = vpop.f32.mrb[38].mxu1  ;;  %1465 = vmatprep.mubr.bf16.mxu0 %v2523_v60 }
 0x358   : > { %v1246_v19 = vadd.f32 %v2243_v18, %v2007_v61  ;;  %v1237_v20 = vpop.f32.mrb[39].mxu1  ;;  %v1287_v22 = vmax.f32 %v1243_v16, 0.0 }
 0x359   : > { %v1238_v21 = vadd.f32 %v2007_v61, %v1237_v20  ;;  %v1285_v25 = vmax.f32 %v1235_v17, 0.0 }
 0x35a   : > { %v1288_v23 = vmax.f32 %v1246_v19, 0.0 }
 0x35b   : > { %v1286_v27 = vmax.f32 %v1238_v21, 0.0 }
 0x35c   : > { %v1300_v26 = vpack.c.bf16 %v1288_v23, %v1287_v22 }
 0x35d   : > { %v1299_v33 = vpack.c.bf16 %v1286_v27, %v1285_v25  ;;  %v2246_v28 = vpop.f32.mrb[40].mxu1 }
 0x35e   : > { %v1259_v30 = vadd.f32 %v2246_v28, %v2007_v61  ;;  %v1250_v31 = vpop.f32.mrb[41].mxu1 }
 0x35f   : > { %v1251_v32 = vadd.f32 %v2007_v61, %v1250_v31  ;;  %v2247_v34 = vpop.f32.mrb[42].mxu1  ;;  %1466 = vmatmul.mubr.bf16.gmra.mrb[24].mxu0 %v1299_v33 }
 0x360   : > { %v1262_v35 = vadd.f32 %v2247_v34, %v2007_v61  ;;  %v1253_v24 = vpop.f32.mrb[43].mxu1  ;;  %1475 = vmatprep.mubr.bf16.mxu0 %v2523_v60  ;;  %v1291_v36 = vmax.f32 %v1259_v30, 0.0 }
 0x361   : > { %v1254_v29 = vadd.f32 %v2007_v61, %v1253_v24  ;;  %v1289_v38 = vmax.f32 %v1251_v32, 0.0 }
 0x362   : > { %v1292_v37 = vmax.f32 %v1262_v35, 0.0 }
 0x363   : > { %v1290_v39 = vmax.f32 %v1254_v29, 0.0 }
 0x364   : > { %v1302_v40 = vpack.c.bf16 %v1292_v37, %v1291_v36 }
 0x365   : > { %v1301_v42 = vpack.c.bf16 %v1290_v39, %v1289_v38  ;;  %v2250_v44 = vpop.f32.mrb[44].mxu1 }
 0x366   : > { %v1275_v46 = vadd.f32 %v2250_v44, %v2007_v61  ;;  %v1266_v45 = vpop.f32.mrb[45].mxu1 }
 0x367   : > { %v1267_v52 = vadd.f32 %v2007_v61, %v1266_v45  ;;  %v2251_v47 = vpop.f32.mrb[46].mxu1  ;;  %1476 = vmatmul.mubr.bf16.gmra.mrb[28].mxu0 %v1300_v26 }
 0x368   : > { %v1278_v48 = vadd.f32 %v2251_v47, %v2007_v61  ;;  %v1269_v50 = vpop.f32.mrb[47].mxu1  ;;  %1485 = vmatprep.mubr.bf16.mxu0 %v2523_v60  ;;  %v1295_v53 = vmax.f32 %v1275_v46, 0.0 }
 0x369   : > { %v1270_v51 = vadd.f32 %v2007_v61, %v1269_v50  ;;  %v1293_v55 = vmax.f32 %v1267_v52, 0.0  ;;  %v2954_v61 = vrot.slane %v1321_v7, %v1329_v59 }
 0x36a   : > { %v1296_v54 = vmax.f32 %v1278_v48, 0.0 }
 0x36b   : > { %v1294_v43 = vmax.f32 %v1270_v51, 0.0 }
 0x36c   : > { %v1304_v56 = vpack.c.bf16 %v1296_v54, %v1295_v53 }
 0x36d   : > { %v1303_v49 = vpack.c.bf16 %v1294_v43, %v1293_v55 }
 0x36f   : > { %1486 = vmatmul.mubr.bf16.gmra.mrb[32].mxu0 %v1301_v42 }
 0x370   : > { %1495 = vmatprep.mubr.bf16.mxu0 %v2523_v60 }
 0x377   : > { %1496 = vmatmul.mubr.bf16.gmra.mrb[36].mxu0 %v1302_v40 }
 0x378   : > { %1505 = vmatprep.mubr.bf16.mxu0 %v2523_v60 }
 0x37f   : > { %1506 = vmatmul.mubr.bf16.gmra.mrb[40].mxu0 %v1303_v49 }
 0x380   : > { %1515 = vmatprep.mubr.bf16.mxu0 %v2523_v60 }
 0x387   : > { %1516 = vmatmul.mubr.bf16.gmra.mrb[44].mxu0 %v1304_v56 }
 0x421   : > { %v1447_v62 = vpop.f32.mrb[16].mxu0 }
 0x422   : > { %v1448_v0 = vadd.f32 %v1447_v62, %v2952_v2  ;;  %v1449_v1 = vpop.f32.mrb[17].mxu0 }
 0x423   : > { %v1450_v3 = vadd.f32 %v1449_v1, %v2954_v61  ;;  %v1451_v60 = vpop.f32.mrb[18].mxu0 }
 0x424   : > { %v2036_v41 = vmul.f32 -1.442695, %v1448_v0  ;;  %v1452_v5 = vadd.f32 %v1451_v60, %v2952_v2  ;;  %v1453_v9 = vpop.f32.mrb[19].mxu0 }
 0x425   : > { %v2037_v11 = vmul.f32 -1.442695, %v1450_v3  ;;  %v1454_v10 = vadd.f32 %v1453_v9, %v2954_v61 }
 0x426   : > { %2386 = vpow2.f32 %v2036_v41  ;;  %v2038_v8 = vmul.f32 -1.442695, %v1452_v5 }
 0x427   : > { %2388 = vpow2.f32 %v2037_v11  ;;  %v2039_v12 = vmul.f32 -1.442695, %v1454_v10 }
 0x428   : > { %2390 = vpow2.f32 %v2038_v8 }
 0x429   : > { %2392 = vpow2.f32 %v2039_v12  ;;  %v1457_v13 = vpop.f32.mrb[20].mxu0 }
 0x42a   : > { %v1458_v14 = vadd.f32 %v1457_v13, %v2952_v2  ;;  %v1459_v6 = vpop.f32.mrb[21].mxu0 }
 0x42b   : > { %v1460_v15 = vadd.f32 %v1459_v6, %v2954_v61  ;;  %v1461_v16 = vpop.f32.mrb[22].mxu0 }
 0x42c   : > { %v2040_v4 = vmul.f32 -1.442695, %v1458_v14  ;;  %v1462_v17 = vadd.f32 %v1461_v16, %v2952_v2  ;;  %v1463_v18 = vpop.f32.mrb[23].mxu0 }
 0x42d   : > { %v2041_v19 = vmul.f32 -1.442695, %v1460_v15  ;;  %v1464_v20 = vadd.f32 %v1463_v18, %v2954_v61 }
 0x42e   : > { %2394 = vpow2.f32 %v2040_v4  ;;  %v2042_v21 = vmul.f32 -1.442695, %v1462_v17 }
 0x42f   : > { %2396 = vpow2.f32 %v2041_v19  ;;  %v2043_v22 = vmul.f32 -1.442695, %v1464_v20 }
 0x430   : > { %v2387_v23 = vpop.eup %2386  ;;  %2398 = vpow2.f32 %v2042_v21 }
 0x431   : > { %v2389_v25 = vpop.eup %2388  ;;  %v1622_v27 = vadd.f32 1.0, %v2387_v23  ;;  %2400 = vpow2.f32 %v2043_v22 }
 0x432   : > { %v2391_v26 = vpop.eup %2390  ;;  %v1623_v33 = vadd.f32 1.0, %v2389_v25  ;;  %v1467_v28 = vpop.f32.mrb[24].mxu0 }
 0x433   : > { %v2393_v30 = vpop.eup %2392  ;;  %2402 = vrcp.f32 %v1622_v27  ;;  %v1624_v31 = vadd.f32 1.0, %v2391_v26  ;;  %v1468_v32 = vadd.f32 %v1467_v28, %v2952_v2  ;;  %v1469_v34 = vpop.f32.mrb[25].mxu0 }
 0x434   : > { %2404 = vrcp.f32 %v1623_v33  ;;  %v1625_v35 = vadd.f32 1.0, %v2393_v30  ;;  %v1470_v24 = vadd.f32 %v1469_v34, %v2954_v61  ;;  %v1471_v29 = vpop.f32.mrb[26].mxu0 }
 0x435   : > { %2406 = vrcp.f32 %v1624_v31  ;;  %v2044_v36 = vmul.f32 -1.442695, %v1468_v32  ;;  %v1472_v37 = vadd.f32 %v1471_v29, %v2952_v2  ;;  %v1473_v38 = vpop.f32.mrb[27].mxu0 }
 0x436   : > { %2408 = vrcp.f32 %v1625_v35  ;;  %v2045_v39 = vmul.f32 -1.442695, %v1470_v24  ;;  %v1474_v40 = vadd.f32 %v1473_v38, %v2954_v61 }
 0x437   : > { %2410 = vpow2.f32 %v2044_v36  ;;  %v2046_v42 = vmul.f32 -1.442695, %v1472_v37 }
 0x438   : > { %v2395_v44 = vpop.eup %2394  ;;  %2412 = vpow2.f32 %v2045_v39  ;;  %v2047_v46 = vmul.f32 -1.442695, %v1474_v40 }
 0x439   : > { %v2397_v45 = vpop.eup %2396  ;;  %v1626_v52 = vadd.f32 1.0, %v2395_v44  ;;  %2414 = vpow2.f32 %v2046_v42 }
 0x43a   : > { %v2399_v47 = vpop.eup %2398  ;;  %v1627_v48 = vadd.f32 1.0, %v2397_v45  ;;  %2416 = vpow2.f32 %v2047_v46  ;;  %v1477_v50 = vpop.f32.mrb[28].mxu0 }
 0x43b   : > { %v2401_v51 = vpop.eup %2400  ;;  %2418 = vrcp.f32 %v1626_v52  ;;  %v1628_v53 = vadd.f32 1.0, %v2399_v47  ;;  %v1478_v54 = vadd.f32 %v1477_v50, %v2952_v2  ;;  %v1479_v55 = vpop.f32.mrb[29].mxu0 }
 0x43c   : > { %2420 = vrcp.f32 %v1627_v48  ;;  %v1629_v43 = vadd.f32 1.0, %v2401_v51  ;;  %v1480_v56 = vadd.f32 %v1479_v55, %v2954_v61  ;;  %v1481_v49 = vpop.f32.mrb[30].mxu0 }
 0x43d   : > { %v2403_v57 = vpop.eup %2402  ;;  %2422 = vrcp.f32 %v1628_v53  ;;  %v2048_v58 = vmul.f32 -1.442695, %v1478_v54  ;;  %v1482_v63 = vadd.f32 %v1481_v49, %v2952_v2  ;;  %v1483_v7 = vpop.f32.mrb[31].mxu0 }
 0x43e   : > { %v2405_v59 = vpop.eup %2404  ;;  %2424 = vrcp.f32 %v1629_v43  ;;  %v2049_v62 = vmul.f32 -1.442695, %v1480_v56  ;;  %v1484_v0 = vadd.f32 %v1483_v7, %v2954_v61 }
 0x43f   : > { %v2407_v1 = vpop.eup %2406  ;;  %v2088_v3 = vpack.c.bf16 %v2405_v59, %v2403_v57  ;;  %2426 = vpow2.f32 %v2048_v58  ;;  %v2050_v60 = vmul.f32 -1.442695, %v1482_v63 }
 0x440   : > { %v2409_v41 = vpop.eup %2408  ;;  %2428 = vpow2.f32 %v2049_v62  ;;  %v2051_v5 = vmul.f32 -1.442695, %v1484_v0 }
 0x441   : > { %v2411_v9 = vpop.eup %2410  ;;  %1814 = vst [vmem:[%s2975_s27] sm:$0xff] %v2088_v3  ;;  %v2089_v11 = vpack.c.bf16 %v2409_v41, %v2407_v1  ;;  %2430 = vpow2.f32 %v2050_v60 }
 0x442   : > { %v2413_v10 = vpop.eup %2412  ;;  %v1630_v8 = vadd.f32 1.0, %v2411_v9  ;;  %2432 = vpow2.f32 %v2051_v5  ;;  %v1487_v12 = vpop.f32.mrb[32].mxu0 }
 0x443   : > { %v2415_v13 = vpop.eup %2414  ;;  %1815 = vst [vmem:[%s2975_s27 + $0x8] sm:$0xff] %v2089_v11  ;;  %v1631_v14 = vadd.f32 1.0, %v2413_v10  ;;  %v1488_v6 = vadd.f32 %v1487_v12, %v2952_v2  ;;  %v1489_v15 = vpop.f32.mrb[33].mxu0 }
 0x444   : > { %v2417_v16 = vpop.eup %2416  ;;  %2434 = vrcp.f32 %v1630_v8  ;;  %v1632_v4 = vadd.f32 1.0, %v2415_v13  ;;  %v1490_v17 = vadd.f32 %v1489_v15, %v2954_v61  ;;  %v1491_v18 = vpop.f32.mrb[34].mxu0 }
 0x445   : > { %v2419_v19 = vpop.eup %2418  ;;  %2436 = vrcp.f32 %v1631_v14  ;;  %v1633_v20 = vadd.f32 1.0, %v2417_v16  ;;  %v2052_v21 = vmul.f32 -1.442695, %v1488_v6  ;;  %v1492_v22 = vadd.f32 %v1491_v18, %v2952_v2  ;;  %v1493_v23 = vpop.f32.mrb[35].mxu0 }
 0x446   : > { %v2421_v25 = vpop.eup %2420  ;;  %2438 = vrcp.f32 %v1632_v4  ;;  %v2053_v27 = vmul.f32 -1.442695, %v1490_v17  ;;  %v1494_v26 = vadd.f32 %v1493_v23, %v2954_v61 }
 0x447   : > { %v2423_v33 = vpop.eup %2422  ;;  %v2090_v28 = vpack.c.bf16 %v2421_v25, %v2419_v19  ;;  %2440 = vrcp.f32 %v1633_v20  ;;  %v2054_v30 = vmul.f32 -1.442695, %v1492_v22 }
 0x448   : > { %v2425_v31 = vpop.eup %2424  ;;  %2442 = vpow2.f32 %v2052_v21  ;;  %v2055_v32 = vmul.f32 -1.442695, %v1494_v26 }
 0x449   : > { %v2427_v34 = vpop.eup %2426  ;;  %1816 = vst [vmem:[%s2975_s27 + $0x10] sm:$0xff] %v2090_v28  ;;  %v2091_v35 = vpack.c.bf16 %v2425_v31, %v2423_v33  ;;  %2444 = vpow2.f32 %v2053_v27 }
 0x44a   : > { %v2429_v24 = vpop.eup %2428  ;;  %v1634_v29 = vadd.f32 1.0, %v2427_v34  ;;  %2446 = vpow2.f32 %v2054_v30  ;;  %v1497_v36 = vpop.f32.mrb[36].mxu0 }
 0x44b   : > { %v2431_v37 = vpop.eup %2430  ;;  %1817 = vst [vmem:[%s2975_s27 + $0x18] sm:$0xff] %v2091_v35  ;;  %v1635_v38 = vadd.f32 1.0, %v2429_v24  ;;  %2448 = vpow2.f32 %v2055_v32  ;;  %v1498_v39 = vadd.f32 %v1497_v36, %v2952_v2  ;;  %v1499_v40 = vpop.f32.mrb[37].mxu0 }
 0x44c   : > { %v2433_v42 = vpop.eup %2432  ;;  %2450 = vrcp.f32 %v1634_v29  ;;  %v1636_v44 = vadd.f32 1.0, %v2431_v37  ;;  %v1500_v46 = vadd.f32 %v1499_v40, %v2954_v61  ;;  %v1501_v45 = vpop.f32.mrb[38].mxu0 }
 0x44d   : > { %2452 = vrcp.f32 %v1635_v38  ;;  %v1637_v52 = vadd.f32 1.0, %v2433_v42  ;;  %v2056_v47 = vmul.f32 -1.442695, %v1498_v39  ;;  %v1502_v48 = vadd.f32 %v1501_v45, %v2952_v2  ;;  %v1503_v50 = vpop.f32.mrb[39].mxu0 }
 0x44e   : > { %v2435_v51 = vpop.eup %2434  ;;  %2454 = vrcp.f32 %v1636_v44  ;;  %v2057_v53 = vmul.f32 -1.442695, %v1500_v46  ;;  %v1504_v54 = vadd.f32 %v1503_v50, %v2954_v61 }
 0x44f   : > { %v2437_v55 = vpop.eup %2436  ;;  %2456 = vrcp.f32 %v1637_v52  ;;  %v2058_v43 = vmul.f32 -1.442695, %v1502_v48 }
 0x450   : > { %v2439_v56 = vpop.eup %2438  ;;  %v2092_v49 = vpack.c.bf16 %v2437_v55, %v2435_v51  ;;  %2458 = vpow2.f32 %v2056_v47  ;;  %v2059_v57 = vmul.f32 -1.442695, %v1504_v54 }
 0x451   : > { %v2441_v58 = vpop.eup %2440  ;;  %2460 = vpow2.f32 %v2057_v53 }
 0x452   : > { %v2443_v63 = vpop.eup %2442  ;;  %1818 = vst [vmem:[%s2975_s27 + $0x20] sm:$0xff] %v2092_v49  ;;  %v2093_v7 = vpack.c.bf16 %v2441_v58, %v2439_v56  ;;  %2462 = vpow2.f32 %v2058_v43  ;;  %v1507_v59 = vpop.f32.mrb[40].mxu0 }
 0x453   : > { %v2445_v62 = vpop.eup %2444  ;;  %v1638_v0 = vadd.f32 1.0, %v2443_v63  ;;  %2464 = vpow2.f32 %v2059_v57  ;;  %v1508_v1 = vadd.f32 %v1507_v59, %v2952_v2  ;;  %v1509_v3 = vpop.f32.mrb[41].mxu0 }
 0x454   : > { %v2447_v60 = vpop.eup %2446  ;;  %1819 = vst [vmem:[%s2975_s27 + $0x28] sm:$0xff] %v2093_v7  ;;  %v1639_v41 = vadd.f32 1.0, %v2445_v62  ;;  %v1510_v5 = vadd.f32 %v1509_v3, %v2954_v61  ;;  %v1511_v9 = vpop.f32.mrb[42].mxu0 }
 0x455   : > { %v2449_v11 = vpop.eup %2448  ;;  %2466 = vrcp.f32 %v1638_v0  ;;  %v1640_v10 = vadd.f32 1.0, %v2447_v60  ;;  %v2060_v8 = vmul.f32 -1.442695, %v1508_v1  ;;  %v1512_v12 = vadd.f32 %v1511_v9, %v2952_v2  ;;  %v1513_v13 = vpop.f32.mrb[43].mxu0 }
 0x456   : > { %v2451_v14 = vpop.eup %2450  ;;  %2468 = vrcp.f32 %v1639_v41  ;;  %v1641_v6 = vadd.f32 1.0, %v2449_v11  ;;  %v2061_v15 = vmul.f32 -1.442695, %v1510_v5  ;;  %v1514_v16 = vadd.f32 %v1513_v13, %v2954_v61 }
 0x457   : > { %v2453_v4 = vpop.eup %2452  ;;  %2470 = vrcp.f32 %v1640_v10  ;;  %v2062_v17 = vmul.f32 -1.442695, %v1512_v12 }
 0x458   : > { %v2455_v18 = vpop.eup %2454  ;;  %v2094_v19 = vpack.c.bf16 %v2453_v4, %v2451_v14  ;;  %2472 = vrcp.f32 %v1641_v6  ;;  %v2063_v20 = vmul.f32 -1.442695, %v1514_v16 }
 0x459   : > { %v2457_v21 = vpop.eup %2456  ;;  %2474 = vpow2.f32 %v2060_v8 }
 0x45a   : > { %v2459_v22 = vpop.eup %2458  ;;  %1820 = vst [vmem:[%s2975_s27 + $0x30] sm:$0xff] %v2094_v19  ;;  %v2095_v23 = vpack.c.bf16 %v2457_v21, %v2455_v18  ;;  %2476 = vpow2.f32 %v2061_v15  ;;  %v1517_v25 = vpop.f32.mrb[44].mxu0 }
 0x45b   : > { %v2461_v27 = vpop.eup %2460  ;;  %v1642_v26 = vadd.f32 1.0, %v2459_v22  ;;  %2478 = vpow2.f32 %v2062_v17  ;;  %v1518_v33 = vadd.f32 %v1517_v25, %v2952_v2  ;;  %v1519_v28 = vpop.f32.mrb[45].mxu0 }
 0x45c   : > { %v2463_v30 = vpop.eup %2462  ;;  %1821 = vst [vmem:[%s2975_s27 + $0x38] sm:$0xff] %v2095_v23  ;;  %v1643_v31 = vadd.f32 1.0, %v2461_v27  ;;  %2480 = vpow2.f32 %v2063_v20  ;;  %v1520_v32 = vadd.f32 %v1519_v28, %v2954_v61  ;;  %v1521_v34 = vpop.f32.mrb[46].mxu0 }
 0x45d   : > { %v2465_v35 = vpop.eup %2464  ;;  %2482 = vrcp.f32 %v1642_v26  ;;  %v1644_v24 = vadd.f32 1.0, %v2463_v30  ;;  %v2064_v29 = vmul.f32 -1.442695, %v1518_v33  ;;  %v1522_v36 = vadd.f32 %v1521_v34, %v2952_v2  ;;  %v1523_v37 = vpop.f32.mrb[47].mxu0 }
 0x45e   : > { %2484 = vrcp.f32 %v1643_v31  ;;  %v1645_v38 = vadd.f32 1.0, %v2465_v35  ;;  %v2065_v39 = vmul.f32 -1.442695, %v1520_v32  ;;  %v1524_v40 = vadd.f32 %v1523_v37, %v2954_v61 }
 0x45f   : > { %v2467_v42 = vpop.eup %2466  ;;  %2486 = vrcp.f32 %v1644_v24  ;;  %v2066_v44 = vmul.f32 -1.442695, %v1522_v36 }
 0x460   : > { %v2469_v46 = vpop.eup %2468  ;;  %2488 = vrcp.f32 %v1645_v38  ;;  %v2067_v45 = vmul.f32 -1.442695, %v1524_v40 }
 0x461   : > { %v2471_v52 = vpop.eup %2470  ;;  %v2096_v47 = vpack.c.bf16 %v2469_v46, %v2467_v42  ;;  %2490 = vpow2.f32 %v2064_v29 }
 0x462   : > { %v2473_v48 = vpop.eup %2472  ;;  %2492 = vpow2.f32 %v2065_v39 }
 0x463   : > { %v2475_v2 = vpop.eup %2474  ;;  %1822 = vst [vmem:[%s2975_s27 + $0x40] sm:$0xff] %v2096_v47  ;;  %v2097_v50 = vpack.c.bf16 %v2473_v48, %v2471_v52  ;;  %2494 = vpow2.f32 %v2066_v44 }
 0x464   : > { %v2477_v51 = vpop.eup %2476  ;;  %v1646_v53 = vadd.f32 1.0, %v2475_v2  ;;  %2496 = vpow2.f32 %v2067_v45 }
 0x465   : > { %v2479_v61 = vpop.eup %2478  ;;  %1823 = vst [vmem:[%s2975_s27 + $0x48] sm:$0xff] %v2097_v50  ;;  %v1647_v54 = vadd.f32 1.0, %v2477_v51 }
 0x466   : > { %v2481_v55 = vpop.eup %2480  ;;  %2498 = vrcp.f32 %v1646_v53  ;;  %v1648_v43 = vadd.f32 1.0, %v2479_v61 }
 0x467   : > { %v2483_v56 = vpop.eup %2482  ;;  %2500 = vrcp.f32 %v1647_v54  ;;  %v1649_v49 = vadd.f32 1.0, %v2481_v55 }
 0x468   : > { %v2485_v57 = vpop.eup %2484  ;;  %2502 = vrcp.f32 %v1648_v43 }
 0x469   : > { %v2487_v58 = vpop.eup %2486  ;;  %v2098_v63 = vpack.c.bf16 %v2485_v57, %v2483_v56  ;;  %2504 = vrcp.f32 %v1649_v49 }
 0x46a   : > { %v2489_v7 = vpop.eup %2488 }
 0x46b   : > { %v2491_v59 = vpop.eup %2490  ;;  %1824 = vst [vmem:[%s2975_s27 + $0x50] sm:$0xff] %v2098_v63  ;;  %v2099_v62 = vpack.c.bf16 %v2489_v7, %v2487_v58 }
 0x46c   : > { %v2493_v0 = vpop.eup %2492  ;;  %v1650_v1 = vadd.f32 1.0, %v2491_v59 }
 0x46d   : > { %v2495_v3 = vpop.eup %2494  ;;  %1825 = vst [vmem:[%s2975_s27 + $0x58] sm:$0xff] %v2099_v62  ;;  %v1651_v60 = vadd.f32 1.0, %v2493_v0 }
 0x46e   : > { %v2497_v41 = vpop.eup %2496  ;;  %2506 = vrcp.f32 %v1650_v1  ;;  %v1652_v5 = vadd.f32 1.0, %v2495_v3 }
 0x46f   : > { %2508 = vrcp.f32 %v1651_v60  ;;  %v1653_v9 = vadd.f32 1.0, %v2497_v41 }
 0x470   : > { %v2499_v11 = vpop.eup %2498  ;;  %2510 = vrcp.f32 %v1652_v5 }
 0x471   : > { %v2501_v10 = vpop.eup %2500  ;;  %2512 = vrcp.f32 %v1653_v9 }
 0x472   : > { %v2503_v8 = vpop.eup %2502  ;;  %v2100_v12 = vpack.c.bf16 %v2501_v10, %v2499_v11 }
 0x473   : > { %v2505_v13 = vpop.eup %2504 }
 0x474   : > { %1826 = vst [vmem:[%s2975_s27 + $0x60] sm:$0xff] %v2100_v12  ;;  %v2101_v14 = vpack.c.bf16 %v2505_v13, %v2503_v8 }
 0x476   : > { %1827 = vst [vmem:[%s2975_s27 + $0x68] sm:$0xff] %v2101_v14 }
 0x478   : > { %v2507_v6 = vpop.eup %2506 }
 0x479   : > { %v2509_v15 = vpop.eup %2508 }
 0x47a   : > { %v2511_v16 = vpop.eup %2510  ;;  %v2102_v4 = vpack.c.bf16 %v2509_v15, %v2507_v6 }
 0x47b   : > { %v2513_v17 = vpop.eup %2512 }
 0x47c   : > { %1828 = vst [vmem:[%s2975_s27 + $0x70] sm:$0xff] %v2102_v4  ;;  %v2103_v18 = vpack.c.bf16 %v2513_v17, %v2511_v16 }
 0x47e   : > { %1829 = vst [vmem:[%s2975_s27 + $0x78] sm:$0xff] %v2103_v18 }
 0x47f PF: > { %s22_s17 = sadd.s32 1, %s2520_s17  }
 0x480   : > { %p19_p4 = scmp.ge.s32.totalorder %s22_s17, 4  }
 0x482   :  { %21 = sbr.rel (!%p19_p4) target bundleno = 1 (0x1), region = 105 }

</bundles_post_ra>
